<compile_context>
chip_gen: v7x
topology: tpu7x:2x2x1
jax: 0.10.0
libtpu: 0.0.40
codegen_flags: <defaults>
</compile_context>

<pallas_src>
import functools

import jax
import jax.numpy as jnp
from jax.experimental import pallas as pl
from jax.experimental.pallas import tpu as pltpu


# ----------------------------------------------------------------------------
# Fused bidirectional-GRU + LayerNorm kernel.
#
# Packed-weight layout (gate-major, directions interleaved inside each gate):
#   columns [g*2H : g*2H+H]      -> gate g, forward direction
#   columns [g*2H+H : (g+1)*2H]  -> gate g, backward direction
# with PyTorch gate order g in (r, z, n).
# w_hh is block-diagonal over directions so one matmul updates both.
# ----------------------------------------------------------------------------
def _bigru_ln_kernel(T, B, H,
                     x_ref, wih_ref, whh_ref, bih_ref, bhh_ref,
                     gamma_ref, beta_ref, out_ref, hn_ref):
    H2 = 2 * H

    # ---- hoisted input projection for BOTH directions, all time steps ------
    x = x_ref[...].astype(jnp.float32)                       # (T*B, D)
    gi_all = (jnp.dot(x, wih_ref[...], preferred_element_type=jnp.float32)
              + bih_ref[...])                                 # (T*B, 6H)

    whh = whh_ref[...]                                        # (2H, 6H)
    bhh = bhh_ref[...]                                        # (1, 6H)

    # Column mask: True on forward-direction columns of the 6H gate vector.
    col = jax.lax.broadcasted_iota(jnp.int32, (1, 6 * H), 1)
    fwd_cols = (col % H2) < H                                 # (1, 6H) bool

    # ---- serial recurrence (both directions share each step) ---------------
    h = jnp.zeros((B, H2), jnp.float32)                       # [h_fwd | h_bwd]
    outs_f = []                                               # h_fwd at time t
    outs_b = []                                               # h_bwd at time T-1-t
    for t in range(T):                                        # statically unrolled
        gi_t = gi_all[t * B:(t + 1) * B, :]                   # time t
        gi_r = gi_all[(T - 1 - t) * B:(T - t) * B, :]         # time T-1-t
        gi = jnp.where(fwd_cols, gi_t, gi_r)                  # fwd cols @ t, bwd @ T-1-t

        gh = jnp.dot(h, whh, preferred_element_type=jnp.float32) + bhh

        r = jax.nn.sigmoid(gi[:, 0:H2] + gh[:, 0:H2])
        z = jax.nn.sigmoid(gi[:, H2:2 * H2] + gh[:, H2:2 * H2])
        n = jnp.tanh(gi[:, 2 * H2:3 * H2] + r * gh[:, 2 * H2:3 * H2])
        h = (1.0 - z) * n + z * h

        outs_f.append(h[:, 0:H])
        outs_b.append(h[:, H:H2])

    # ---- fused LayerNorm epilogue + single lane-dense output store ---------
    gamma = gamma_ref[...]                                    # (1, 2H)
    beta = beta_ref[...]                                      # (1, 2H)
    normed = []
    for s in range(T):
        y = jnp.concatenate([outs_f[s], outs_b[T - 1 - s]], axis=-1)  # (B, 2H)
        m = jnp.mean(y, axis=-1, keepdims=True)
        v = jnp.mean(jnp.square(y - m), axis=-1, keepdims=True)
        yn = (y - m) * jax.lax.rsqrt(v + 1e-5)                # PyTorch eps=1e-5
        normed.append(yn * gamma + beta)

    out_ref[...] = jnp.concatenate(normed, axis=-1)           # (B, T*2H), one store
    hn_ref[...] = h                                           # [h_n fwd | h_n bwd]


def _fused_bigru_ln(x2d, w_ih_cat, w_hh_bd, b_ih_cat, b_hh_cat, gamma, beta,
                    *, T, B, D, H):
    kernel = functools.partial(_bigru_ln_kernel, T, B, H)
    out2d, hcat = pl.pallas_call(
        kernel,
        out_shape=(jax.ShapeDtypeStruct((B, T * 2 * H), jnp.float32),
                   jax.ShapeDtypeStruct((B, 2 * H), jnp.float32)),
        grid_spec=pltpu.PrefetchScalarGridSpec(
            num_scalar_prefetch=0,
            grid=(1,),
            in_specs=[
                pl.BlockSpec((T * B, D), lambda i: (0, 0)),
                pl.BlockSpec((D, 6 * H), lambda i: (0, 0)),
                pl.BlockSpec((2 * H, 6 * H), lambda i: (0, 0)),
                pl.BlockSpec((1, 6 * H), lambda i: (0, 0)),
                pl.BlockSpec((1, 6 * H), lambda i: (0, 0)),
                pl.BlockSpec((1, 2 * H), lambda i: (0, 0)),
                pl.BlockSpec((1, 2 * H), lambda i: (0, 0)),
            ],
            out_specs=[
                pl.BlockSpec((B, T * 2 * H), lambda i: (0, 0)),
                pl.BlockSpec((B, 2 * H), lambda i: (0, 0)),
            ],
        ),
        compiler_params=pltpu.CompilerParams(
            dimension_semantics=("arbitrary",)),
    )(x2d, w_ih_cat, w_hh_bd, b_ih_cat, b_hh_cat, gamma, beta)
    return out2d, hcat


# ----------------------------------------------------------------------------
# Wrapper-side weight packing (tiny, one-off layout plumbing).
# ----------------------------------------------------------------------------
def _pack_params(params, D, H):
    wf = params["w_ih_f"].reshape(D, 3, H)
    wb = params["w_ih_b"].reshape(D, 3, H)
    w_ih_cat = jnp.stack([wf, wb], axis=2).reshape(D, 6 * H)          # (D, 6H)

    zeros = jnp.zeros((H, 3, H), jnp.float32)
    top = jnp.stack([params["w_hh_f"].reshape(H, 3, H), zeros], axis=2).reshape(H, 6 * H)
    bot = jnp.stack([zeros, params["w_hh_b"].reshape(H, 3, H)], axis=2).reshape(H, 6 * H)
    w_hh_bd = jnp.concatenate([top, bot], axis=0)                      # (2H, 6H) block-diag

    b_ih_cat = jnp.stack([params["b_ih_f"].reshape(3, H),
                          params["b_ih_b"].reshape(3, H)], axis=1).reshape(1, 6 * H)
    b_hh_cat = jnp.stack([params["b_hh_f"].reshape(3, H),
                          params["b_hh_b"].reshape(3, H)], axis=1).reshape(1, 6 * H)
    return w_ih_cat, w_hh_bd, b_ih_cat, b_hh_cat


# ----------------------------------------------------------------------------
# NormGRU forward (bidirectional=True, layernorm=True, first=True)
# ----------------------------------------------------------------------------
def norm_gru_forward(x, params):
    T, B, D = x.shape
    H = params["w_hh_f"].shape[0]

    w_ih_cat, w_hh_bd, b_ih_cat, b_hh_cat = _pack_params(params, D, H)
    x2d = x.reshape(T * B, D).astype(jnp.float32)

    out2d, hcat = _fused_bigru_ln(
        x2d, w_ih_cat, w_hh_bd, b_ih_cat, b_hh_cat,
        params["gamma"], params["beta"], T=T, B=B, D=D, H=H)

    output = out2d.reshape(B, T, 2 * H).transpose(1, 0, 2)     # (T, B, 2H)
    h_n = jnp.stack([hcat[:, :H], hcat[:, H:]], axis=0)        # (2, B, H)
    # TODO(synk): BatchNorm1d branch (layernorm=False) not implemented in this config.
    return output, h_n


# ----------------------------------------------------------------------------
# Pure-JAX reference for verification
# ----------------------------------------------------------------------------
def _ref_gru_dir(x, w_ih_t, w_hh_t, b_ih, b_hh):
    H = w_hh_t.shape[0]

    def step(h, x_t):
        gi = x_t @ w_ih_t + b_ih
        gh = h @ w_hh_t + b_hh
        r = jax.nn.sigmoid(gi[:, :H] + gh[:, :H])
        z = jax.nn.sigmoid(gi[:, H:2 * H] + gh[:, H:2 * H])
        n = jnp.tanh(gi[:, 2 * H:] + r * gh[:, 2 * H:])
        h_new = (1.0 - z) * n + z * h
        return h_new, h_new

    h0 = jnp.zeros((x.shape[1], H), jnp.float32)
    hT, ys = jax.lax.scan(step, h0, x)
    return ys, hT


def _ref_forward(x, params):
    out_f, h_f = _ref_gru_dir(x, params["w_ih_f"], params["w_hh_f"],
                              params["b_ih_f"], params["b_hh_f"])
    x_rev = jnp.flip(x, axis=0)
    out_b_run, h_b = _ref_gru_dir(x_rev, params["w_ih_b"], params["w_hh_b"],
                                  params["b_ih_b"], params["b_hh_b"])
    out_b = jnp.flip(out_b_run, axis=0)
    output = jnp.concatenate([out_f, out_b], axis=-1)
    h_n = jnp.stack([h_f, h_b], axis=0)
    mean = jnp.mean(output, axis=-1, keepdims=True)
    var = jnp.mean(jnp.square(output - mean), axis=-1, keepdims=True)
    output = (output - mean) * jax.lax.rsqrt(var + 1e-5)
    output = output * params["gamma"] + params["beta"]
    return output, h_n


if __name__ == "__main__":
    T, B, D = 8, 2, 16          # seq=8, batch=2, input_size = hidden_size = 16
    H = D

    key = jax.random.PRNGKey(0)
    ks = jax.random.split(key, 11)
    scale = 1.0 / float(jnp.sqrt(H))

    def u(k, shape):
        return jax.random.uniform(k, shape, jnp.float32, -scale, scale)

    params = {
        # forward-direction GRU weights (stored pre-transposed: (in, 3H), gate order r,z,n)
        "w_ih_f": u(ks[0], (D, 3 * H)),
        "w_hh_f": u(ks[1], (H, 3 * H)),
        "b_ih_f": u(ks[2], (1, 3 * H)),
        "b_hh_f": u(ks[3], (1, 3 * H)),
        # reverse-direction GRU weights
        "w_ih_b": u(ks[4], (D, 3 * H)),
        "w_hh_b": u(ks[5], (H, 3 * H)),
        "b_ih_b": u(ks[6], (1, 3 * H)),
        "b_hh_b": u(ks[7], (1, 3 * H)),
        # LayerNorm affine params over C = 2H (deterministic, non-trivial)
        "gamma": 1.0 + u(ks[8], (1, 2 * H)),
        "beta": u(ks[9], (1, 2 * H)),
    }

    x = jax.random.normal(ks[10], (T, B, D), jnp.float32)

    out, h_n = norm_gru_forward(x, params)
    out, h_n = jax.block_until_ready((out, h_n))

    out_ref, h_n_ref = _ref_forward(x, params)
    assert jnp.allclose(out, out_ref, atol=1e-5, rtol=1e-5), "output mismatch"
    assert jnp.allclose(h_n, h_n_ref, atol=1e-5, rtol=1e-5), "h_n mismatch"

    print("KERNEL_OK")
</pallas_src>

<mosaic_0001>
module attributes {stable_mosaic.version = 11 : i64} {
  func.func @_bigru_ln_kernel(%arg0: i32, %arg1: memref<16x16xf32, #tpu.memory_space<vmem>>, %arg2: memref<16x96xf32, #tpu.memory_space<vmem>>, %arg3: memref<32x96xf32, #tpu.memory_space<vmem>>, %arg4: memref<1x96xf32, #tpu.memory_space<vmem>>, %arg5: memref<1x96xf32, #tpu.memory_space<vmem>>, %arg6: memref<1x32xf32, #tpu.memory_space<vmem>>, %arg7: memref<1x32xf32, #tpu.memory_space<vmem>>, %arg8: memref<2x256xf32, #tpu.memory_space<vmem>>, %arg9: memref<2x32xf32, #tpu.memory_space<vmem>>) attributes {dimension_semantics = [#tpu.dimension_semantics<arbitrary>], iteration_bounds = array<i64: 1>, scalar_prefetch = 0 : i64, scratch_operands = 0 : i64, tpu.core_type = #tpu.core_type<tc>, window_params = [{pipeline_mode = #tpu.pipeline_mode<synchronous>, transform_indices = @transform_0, window_bounds = array<i64: 16, 16>}, {pipeline_mode = #tpu.pipeline_mode<synchronous>, transform_indices = @transform_1, window_bounds = array<i64: 16, 96>}, {pipeline_mode = #tpu.pipeline_mode<synchronous>, transform_indices = @transform_2, window_bounds = array<i64: 32, 96>}, {pipeline_mode = #tpu.pipeline_mode<synchronous>, transform_indices = @transform_3, window_bounds = array<i64: 1, 96>}, {pipeline_mode = #tpu.pipeline_mode<synchronous>, transform_indices = @transform_4, window_bounds = array<i64: 1, 96>}, {pipeline_mode = #tpu.pipeline_mode<synchronous>, transform_indices = @transform_5, window_bounds = array<i64: 1, 32>}, {pipeline_mode = #tpu.pipeline_mode<synchronous>, transform_indices = @transform_6, window_bounds = array<i64: 1, 32>}, {pipeline_mode = #tpu.pipeline_mode<synchronous>, transform_indices = @transform_7, window_bounds = array<i64: 2, 256>}, {pipeline_mode = #tpu.pipeline_mode<synchronous>, transform_indices = @transform_8, window_bounds = array<i64: 2, 32>}]} {
    %c0 = arith.constant 0 : index
    %c0_0 = arith.constant 0 : index
    %0 = vector.load %arg1[%c0, %c0_0] : memref<16x16xf32, #tpu.memory_space<vmem>>, vector<16x16xf32>
    %c0_1 = arith.constant 0 : index
    %c0_2 = arith.constant 0 : index
    %1 = vector.load %arg2[%c0_1, %c0_2] : memref<16x96xf32, #tpu.memory_space<vmem>>, vector<16x96xf32>
    %cst = arith.constant dense<0.000000e+00> : vector<16x96xf32>
    %2 = tpu.matmul %0, %1, %cst {dimension_numbers = #tpu.dot_dimension_numbers<[1], [0], [0], [1], [0, 0, 1, 1], [], []>} : vector<16x16xf32>, vector<16x96xf32>, vector<16x96xf32> -> vector<16x96xf32>
    %c0_3 = arith.constant 0 : index
    %c0_4 = arith.constant 0 : index
    %3 = vector.load %arg4[%c0_3, %c0_4] : memref<1x96xf32, #tpu.memory_space<vmem>>, vector<1x96xf32>
    %4 = vector.broadcast %3 : vector<1x96xf32> to vector<16x96xf32>
    %5 = arith.addf %2, %4 : vector<16x96xf32>
    %c0_5 = arith.constant 0 : index
    %c0_6 = arith.constant 0 : index
    %6 = vector.load %arg3[%c0_5, %c0_6] : memref<32x96xf32, #tpu.memory_space<vmem>>, vector<32x96xf32>
    %c0_7 = arith.constant 0 : index
    %c0_8 = arith.constant 0 : index
    %7 = vector.load %arg5[%c0_7, %c0_8] : memref<1x96xf32, #tpu.memory_space<vmem>>, vector<1x96xf32>
    %8 = tpu.iota {dimensions = array<i32: 1>} : vector<1x96xi32>
    %c32_i32 = arith.constant 32 : i32
    %c0_i32 = arith.constant 0 : i32
    %9 = arith.cmpi eq, %c32_i32, %c0_i32 : i32
    %c1_i32 = arith.constant 1 : i32
    %10 = arith.select %9, %c1_i32, %c32_i32 : i32
    %11 = vector.broadcast %10 : i32 to vector<1x96xi32>
    %12 = arith.remsi %8, %11 : vector<1x96xi32>
    %c0_i32_9 = arith.constant 0 : i32
    %13 = vector.broadcast %c0_i32_9 : i32 to vector<1x96xi32>
    %14 = arith.cmpi ne, %12, %13 : vector<1x96xi32>
    %c0_i32_10 = arith.constant 0 : i32
    %15 = vector.broadcast %c0_i32_10 : i32 to vector<1x96xi32>
    %16 = arith.cmpi slt, %12, %15 : vector<1x96xi32>
    %c0_i32_11 = arith.constant 0 : i32
    %17 = arith.cmpi slt, %10, %c0_i32_11 : i32
    %18 = vector.broadcast %17 : i1 to vector<1x96xi1>
    %19 = vector.broadcast %18 : vector<1x96xi1> to vector<1x96xi1>
    %20 = arith.xori %16, %19 : vector<1x96xi1>
    %21 = arith.andi %20, %14 : vector<1x96xi1>
    %22 = vector.broadcast %10 : i32 to vector<1x96xi32>
    %23 = arith.addi %12, %22 : vector<1x96xi32>
    %24 = arith.select %21, %23, %12 : vector<1x96xi1>, vector<1x96xi32>
    %c16_i32 = arith.constant 16 : i32
    %25 = vector.broadcast %c16_i32 : i32 to vector<1x96xi32>
    %26 = arith.cmpi slt, %24, %25 : vector<1x96xi32>
    %cst_12 = arith.constant 0.000000e+00 : f32
    %27 = vector.broadcast %cst_12 : f32 to vector<2x32xf32>
    %28 = vector.extract_strided_slice %5 {offsets = [0, 0], sizes = [2, 96], strides = [1, 1]} : vector<16x96xf32> to vector<2x96xf32>
    %29 = vector.extract_strided_slice %5 {offsets = [14, 0], sizes = [2, 96], strides = [1, 1]} : vector<16x96xf32> to vector<2x96xf32>
    %30 = vector.shape_cast %26 : vector<1x96xi1> to vector<1x96xi1>
    %31 = vector.broadcast %30 : vector<1x96xi1> to vector<2x96xi1>
    %32 = arith.select %31, %28, %29 : vector<2x96xi1>, vector<2x96xf32>
    %cst_13 = arith.constant dense<0.000000e+00> : vector<2x96xf32>
    %33 = tpu.matmul %27, %6, %cst_13 {dimension_numbers = #tpu.dot_dimension_numbers<[1], [0], [0], [1], [0, 0, 1, 1], [], []>} : vector<2x32xf32>, vector<32x96xf32>, vector<2x96xf32> -> vector<2x96xf32>
    %34 = vector.broadcast %7 : vector<1x96xf32> to vector<2x96xf32>
    %35 = arith.addf %33, %34 : vector<2x96xf32>
    %36 = vector.extract_strided_slice %32 {offsets = [0, 0], sizes = [2, 32], strides = [1, 1]} : vector<2x96xf32> to vector<2x32xf32>
    %37 = vector.extract_strided_slice %35 {offsets = [0, 0], sizes = [2, 32], strides = [1, 1]} : vector<2x96xf32> to vector<2x32xf32>
    %38 = arith.addf %36, %37 : vector<2x32xf32>
    %39 = arith.negf %38 : vector<2x32xf32>
    %40 = math.exp %39 : vector<2x32xf32>
    %cst_14 = arith.constant 1.000000e+00 : f32
    %41 = vector.broadcast %cst_14 : f32 to vector<2x32xf32>
    %42 = arith.addf %41, %40 : vector<2x32xf32>
    %43 = arith.divf %41, %42 : vector<2x32xf32>
    %44 = vector.extract_strided_slice %32 {offsets = [0, 32], sizes = [2, 32], strides = [1, 1]} : vector<2x96xf32> to vector<2x32xf32>
    %45 = vector.extract_strided_slice %35 {offsets = [0, 32], sizes = [2, 32], strides = [1, 1]} : vector<2x96xf32> to vector<2x32xf32>
    %46 = arith.addf %44, %45 : vector<2x32xf32>
    %47 = arith.negf %46 : vector<2x32xf32>
    %48 = math.exp %47 : vector<2x32xf32>
    %cst_15 = arith.constant 1.000000e+00 : f32
    %49 = vector.broadcast %cst_15 : f32 to vector<2x32xf32>
    %50 = arith.addf %49, %48 : vector<2x32xf32>
    %51 = arith.divf %49, %50 : vector<2x32xf32>
    %52 = vector.extract_strided_slice %32 {offsets = [0, 64], sizes = [2, 32], strides = [1, 1]} : vector<2x96xf32> to vector<2x32xf32>
    %53 = vector.extract_strided_slice %35 {offsets = [0, 64], sizes = [2, 32], strides = [1, 1]} : vector<2x96xf32> to vector<2x32xf32>
    %54 = arith.mulf %43, %53 : vector<2x32xf32>
    %55 = arith.addf %52, %54 : vector<2x32xf32>
    %56 = math.tanh %55 : vector<2x32xf32>
    %cst_16 = arith.constant 1.000000e+00 : f32
    %57 = vector.broadcast %cst_16 : f32 to vector<2x32xf32>
    %58 = arith.subf %57, %51 : vector<2x32xf32>
    %59 = arith.mulf %58, %56 : vector<2x32xf32>
    %60 = arith.mulf %51, %27 : vector<2x32xf32>
    %61 = arith.addf %59, %60 : vector<2x32xf32>
    %62 = vector.extract_strided_slice %61 {offsets = [0, 0], sizes = [2, 16], strides = [1, 1]} : vector<2x32xf32> to vector<2x16xf32>
    %63 = vector.extract_strided_slice %61 {offsets = [0, 16], sizes = [2, 16], strides = [1, 1]} : vector<2x32xf32> to vector<2x16xf32>
    %64 = vector.extract_strided_slice %5 {offsets = [2, 0], sizes = [2, 96], strides = [1, 1]} : vector<16x96xf32> to vector<2x96xf32>
    %65 = vector.extract_strided_slice %5 {offsets = [12, 0], sizes = [2, 96], strides = [1, 1]} : vector<16x96xf32> to vector<2x96xf32>
    %66 = vector.shape_cast %26 : vector<1x96xi1> to vector<1x96xi1>
    %67 = vector.broadcast %66 : vector<1x96xi1> to vector<2x96xi1>
    %68 = arith.select %67, %64, %65 : vector<2x96xi1>, vector<2x96xf32>
    %cst_17 = arith.constant dense<0.000000e+00> : vector<2x96xf32>
    %69 = tpu.matmul %61, %6, %cst_17 {dimension_numbers = #tpu.dot_dimension_numbers<[1], [0], [0], [1], [0, 0, 1, 1], [], []>} : vector<2x32xf32>, vector<32x96xf32>, vector<2x96xf32> -> vector<2x96xf32>
    %70 = vector.broadcast %7 : vector<1x96xf32> to vector<2x96xf32>
    %71 = arith.addf %69, %70 : vector<2x96xf32>
    %72 = vector.extract_strided_slice %68 {offsets = [0, 0], sizes = [2, 32], strides = [1, 1]} : vector<2x96xf32> to vector<2x32xf32>
    %73 = vector.extract_strided_slice %71 {offsets = [0, 0], sizes = [2, 32], strides = [1, 1]} : vector<2x96xf32> to vector<2x32xf32>
    %74 = arith.addf %72, %73 : vector<2x32xf32>
    %75 = arith.negf %74 : vector<2x32xf32>
    %76 = math.exp %75 : vector<2x32xf32>
    %cst_18 = arith.constant 1.000000e+00 : f32
    %77 = vector.broadcast %cst_18 : f32 to vector<2x32xf32>
    %78 = arith.addf %77, %76 : vector<2x32xf32>
    %79 = arith.divf %77, %78 : vector<2x32xf32>
    %80 = vector.extract_strided_slice %68 {offsets = [0, 32], sizes = [2, 32], strides = [1, 1]} : vector<2x96xf32> to vector<2x32xf32>
    %81 = vector.extract_strided_slice %71 {offsets = [0, 32], sizes = [2, 32], strides = [1, 1]} : vector<2x96xf32> to vector<2x32xf32>
    %82 = arith.addf %80, %81 : vector<2x32xf32>
    %83 = arith.negf %82 : vector<2x32xf32>
    %84 = math.exp %83 : vector<2x32xf32>
    %cst_19 = arith.constant 1.000000e+00 : f32
    %85 = vector.broadcast %cst_19 : f32 to vector<2x32xf32>
    %86 = arith.addf %85, %84 : vector<2x32xf32>
    %87 = arith.divf %85, %86 : vector<2x32xf32>
    %88 = vector.extract_strided_slice %68 {offsets = [0, 64], sizes = [2, 32], strides = [1, 1]} : vector<2x96xf32> to vector<2x32xf32>
    %89 = vector.extract_strided_slice %71 {offsets = [0, 64], sizes = [2, 32], strides = [1, 1]} : vector<2x96xf32> to vector<2x32xf32>
    %90 = arith.mulf %79, %89 : vector<2x32xf32>
    %91 = arith.addf %88, %90 : vector<2x32xf32>
    %92 = math.tanh %91 : vector<2x32xf32>
    %cst_20 = arith.constant 1.000000e+00 : f32
    %93 = vector.broadcast %cst_20 : f32 to vector<2x32xf32>
    %94 = arith.subf %93, %87 : vector<2x32xf32>
    %95 = arith.mulf %94, %92 : vector<2x32xf32>
    %96 = arith.mulf %87, %61 : vector<2x32xf32>
    %97 = arith.addf %95, %96 : vector<2x32xf32>
    %98 = vector.extract_strided_slice %97 {offsets = [0, 0], sizes = [2, 16], strides = [1, 1]} : vector<2x32xf32> to vector<2x16xf32>
    %99 = vector.extract_strided_slice %97 {offsets = [0, 16], sizes = [2, 16], strides = [1, 1]} : vector<2x32xf32> to vector<2x16xf32>
    %100 = vector.extract_strided_slice %5 {offsets = [4, 0], sizes = [2, 96], strides = [1, 1]} : vector<16x96xf32> to vector<2x96xf32>
    %101 = vector.extract_strided_slice %5 {offsets = [10, 0], sizes = [2, 96], strides = [1, 1]} : vector<16x96xf32> to vector<2x96xf32>
    %102 = vector.shape_cast %26 : vector<1x96xi1> to vector<1x96xi1>
    %103 = vector.broadcast %102 : vector<1x96xi1> to vector<2x96xi1>
    %104 = arith.select %103, %100, %101 : vector<2x96xi1>, vector<2x96xf32>
    %cst_21 = arith.constant dense<0.000000e+00> : vector<2x96xf32>
    %105 = tpu.matmul %97, %6, %cst_21 {dimension_numbers = #tpu.dot_dimension_numbers<[1], [0], [0], [1], [0, 0, 1, 1], [], []>} : vector<2x32xf32>, vector<32x96xf32>, vector<2x96xf32> -> vector<2x96xf32>
    %106 = vector.broadcast %7 : vector<1x96xf32> to vector<2x96xf32>
    %107 = arith.addf %105, %106 : vector<2x96xf32>
    %108 = vector.extract_strided_slice %104 {offsets = [0, 0], sizes = [2, 32], strides = [1, 1]} : vector<2x96xf32> to vector<2x32xf32>
    %109 = vector.extract_strided_slice %107 {offsets = [0, 0], sizes = [2, 32], strides = [1, 1]} : vector<2x96xf32> to vector<2x32xf32>
    %110 = arith.addf %108, %109 : vector<2x32xf32>
    %111 = arith.negf %110 : vector<2x32xf32>
    %112 = math.exp %111 : vector<2x32xf32>
    %cst_22 = arith.constant 1.000000e+00 : f32
    %113 = vector.broadcast %cst_22 : f32 to vector<2x32xf32>
    %114 = arith.addf %113, %112 : vector<2x32xf32>
    %115 = arith.divf %113, %114 : vector<2x32xf32>
    %116 = vector.extract_strided_slice %104 {offsets = [0, 32], sizes = [2, 32], strides = [1, 1]} : vector<2x96xf32> to vector<2x32xf32>
    %117 = vector.extract_strided_slice %107 {offsets = [0, 32], sizes = [2, 32], strides = [1, 1]} : vector<2x96xf32> to vector<2x32xf32>
    %118 = arith.addf %116, %117 : vector<2x32xf32>
    %119 = arith.negf %118 : vector<2x32xf32>
    %120 = math.exp %119 : vector<2x32xf32>
    %cst_23 = arith.constant 1.000000e+00 : f32
    %121 = vector.broadcast %cst_23 : f32 to vector<2x32xf32>
    %122 = arith.addf %121, %120 : vector<2x32xf32>
    %123 = arith.divf %121, %122 : vector<2x32xf32>
    %124 = vector.extract_strided_slice %104 {offsets = [0, 64], sizes = [2, 32], strides = [1, 1]} : vector<2x96xf32> to vector<2x32xf32>
    %125 = vector.extract_strided_slice %107 {offsets = [0, 64], sizes = [2, 32], strides = [1, 1]} : vector<2x96xf32> to vector<2x32xf32>
    %126 = arith.mulf %115, %125 : vector<2x32xf32>
    %127 = arith.addf %124, %126 : vector<2x32xf32>
    %128 = math.tanh %127 : vector<2x32xf32>
    %cst_24 = arith.constant 1.000000e+00 : f32
    %129 = vector.broadcast %cst_24 : f32 to vector<2x32xf32>
    %130 = arith.subf %129, %123 : vector<2x32xf32>
    %131 = arith.mulf %130, %128 : vector<2x32xf32>
    %132 = arith.mulf %123, %97 : vector<2x32xf32>
    %133 = arith.addf %131, %132 : vector<2x32xf32>
    %134 = vector.extract_strided_slice %133 {offsets = [0, 0], sizes = [2, 16], strides = [1, 1]} : vector<2x32xf32> to vector<2x16xf32>
    %135 = vector.extract_strided_slice %133 {offsets = [0, 16], sizes = [2, 16], strides = [1, 1]} : vector<2x32xf32> to vector<2x16xf32>
    %136 = vector.extract_strided_slice %5 {offsets = [6, 0], sizes = [2, 96], strides = [1, 1]} : vector<16x96xf32> to vector<2x96xf32>
    %137 = vector.extract_strided_slice %5 {offsets = [8, 0], sizes = [2, 96], strides = [1, 1]} : vector<16x96xf32> to vector<2x96xf32>
    %138 = vector.shape_cast %26 : vector<1x96xi1> to vector<1x96xi1>
    %139 = vector.broadcast %138 : vector<1x96xi1> to vector<2x96xi1>
    %140 = arith.select %139, %136, %137 : vector<2x96xi1>, vector<2x96xf32>
    %cst_25 = arith.constant dense<0.000000e+00> : vector<2x96xf32>
    %141 = tpu.matmul %133, %6, %cst_25 {dimension_numbers = #tpu.dot_dimension_numbers<[1], [0], [0], [1], [0, 0, 1, 1], [], []>} : vector<2x32xf32>, vector<32x96xf32>, vector<2x96xf32> -> vector<2x96xf32>
    %142 = vector.broadcast %7 : vector<1x96xf32> to vector<2x96xf32>
    %143 = arith.addf %141, %142 : vector<2x96xf32>
    %144 = vector.extract_strided_slice %140 {offsets = [0, 0], sizes = [2, 32], strides = [1, 1]} : vector<2x96xf32> to vector<2x32xf32>
    %145 = vector.extract_strided_slice %143 {offsets = [0, 0], sizes = [2, 32], strides = [1, 1]} : vector<2x96xf32> to vector<2x32xf32>
    %146 = arith.addf %144, %145 : vector<2x32xf32>
    %147 = arith.negf %146 : vector<2x32xf32>
    %148 = math.exp %147 : vector<2x32xf32>
    %cst_26 = arith.constant 1.000000e+00 : f32
    %149 = vector.broadcast %cst_26 : f32 to vector<2x32xf32>
    %150 = arith.addf %149, %148 : vector<2x32xf32>
    %151 = arith.divf %149, %150 : vector<2x32xf32>
    %152 = vector.extract_strided_slice %140 {offsets = [0, 32], sizes = [2, 32], strides = [1, 1]} : vector<2x96xf32> to vector<2x32xf32>
    %153 = vector.extract_strided_slice %143 {offsets = [0, 32], sizes = [2, 32], strides = [1, 1]} : vector<2x96xf32> to vector<2x32xf32>
    %154 = arith.addf %152, %153 : vector<2x32xf32>
    %155 = arith.negf %154 : vector<2x32xf32>
    %156 = math.exp %155 : vector<2x32xf32>
    %cst_27 = arith.constant 1.000000e+00 : f32
    %157 = vector.broadcast %cst_27 : f32 to vector<2x32xf32>
    %158 = arith.addf %157, %156 : vector<2x32xf32>
    %159 = arith.divf %157, %158 : vector<2x32xf32>
    %160 = vector.extract_strided_slice %140 {offsets = [0, 64], sizes = [2, 32], strides = [1, 1]} : vector<2x96xf32> to vector<2x32xf32>
    %161 = vector.extract_strided_slice %143 {offsets = [0, 64], sizes = [2, 32], strides = [1, 1]} : vector<2x96xf32> to vector<2x32xf32>
    %162 = arith.mulf %151, %161 : vector<2x32xf32>
    %163 = arith.addf %160, %162 : vector<2x32xf32>
    %164 = math.tanh %163 : vector<2x32xf32>
    %cst_28 = arith.constant 1.000000e+00 : f32
    %165 = vector.broadcast %cst_28 : f32 to vector<2x32xf32>
    %166 = arith.subf %165, %159 : vector<2x32xf32>
    %167 = arith.mulf %166, %164 : vector<2x32xf32>
    %168 = arith.mulf %159, %133 : vector<2x32xf32>
    %169 = arith.addf %167, %168 : vector<2x32xf32>
    %170 = vector.extract_strided_slice %169 {offsets = [0, 0], sizes = [2, 16], strides = [1, 1]} : vector<2x32xf32> to vector<2x16xf32>
    %171 = vector.extract_strided_slice %169 {offsets = [0, 16], sizes = [2, 16], strides = [1, 1]} : vector<2x32xf32> to vector<2x16xf32>
    %172 = vector.extract_strided_slice %5 {offsets = [8, 0], sizes = [2, 96], strides = [1, 1]} : vector<16x96xf32> to vector<2x96xf32>
    %173 = vector.extract_strided_slice %5 {offsets = [6, 0], sizes = [2, 96], strides = [1, 1]} : vector<16x96xf32> to vector<2x96xf32>
    %174 = vector.shape_cast %26 : vector<1x96xi1> to vector<1x96xi1>
    %175 = vector.broadcast %174 : vector<1x96xi1> to vector<2x96xi1>
    %176 = arith.select %175, %172, %173 : vector<2x96xi1>, vector<2x96xf32>
    %cst_29 = arith.constant dense<0.000000e+00> : vector<2x96xf32>
    %177 = tpu.matmul %169, %6, %cst_29 {dimension_numbers = #tpu.dot_dimension_numbers<[1], [0], [0], [1], [0, 0, 1, 1], [], []>} : vector<2x32xf32>, vector<32x96xf32>, vector<2x96xf32> -> vector<2x96xf32>
    %178 = vector.broadcast %7 : vector<1x96xf32> to vector<2x96xf32>
    %179 = arith.addf %177, %178 : vector<2x96xf32>
    %180 = vector.extract_strided_slice %176 {offsets = [0, 0], sizes = [2, 32], strides = [1, 1]} : vector<2x96xf32> to vector<2x32xf32>
    %181 = vector.extract_strided_slice %179 {offsets = [0, 0], sizes = [2, 32], strides = [1, 1]} : vector<2x96xf32> to vector<2x32xf32>
    %182 = arith.addf %180, %181 : vector<2x32xf32>
    %183 = arith.negf %182 : vector<2x32xf32>
    %184 = math.exp %183 : vector<2x32xf32>
    %cst_30 = arith.constant 1.000000e+00 : f32
    %185 = vector.broadcast %cst_30 : f32 to vector<2x32xf32>
    %186 = arith.addf %185, %184 : vector<2x32xf32>
    %187 = arith.divf %185, %186 : vector<2x32xf32>
    %188 = vector.extract_strided_slice %176 {offsets = [0, 32], sizes = [2, 32], strides = [1, 1]} : vector<2x96xf32> to vector<2x32xf32>
    %189 = vector.extract_strided_slice %179 {offsets = [0, 32], sizes = [2, 32], strides = [1, 1]} : vector<2x96xf32> to vector<2x32xf32>
    %190 = arith.addf %188, %189 : vector<2x32xf32>
    %191 = arith.negf %190 : vector<2x32xf32>
    %192 = math.exp %191 : vector<2x32xf32>
    %cst_31 = arith.constant 1.000000e+00 : f32
    %193 = vector.broadcast %cst_31 : f32 to vector<2x32xf32>
    %194 = arith.addf %193, %192 : vector<2x32xf32>
    %195 = arith.divf %193, %194 : vector<2x32xf32>
    %196 = vector.extract_strided_slice %176 {offsets = [0, 64], sizes = [2, 32], strides = [1, 1]} : vector<2x96xf32> to vector<2x32xf32>
    %197 = vector.extract_strided_slice %179 {offsets = [0, 64], sizes = [2, 32], strides = [1, 1]} : vector<2x96xf32> to vector<2x32xf32>
    %198 = arith.mulf %187, %197 : vector<2x32xf32>
    %199 = arith.addf %196, %198 : vector<2x32xf32>
    %200 = math.tanh %199 : vector<2x32xf32>
    %cst_32 = arith.constant 1.000000e+00 : f32
    %201 = vector.broadcast %cst_32 : f32 to vector<2x32xf32>
    %202 = arith.subf %201, %195 : vector<2x32xf32>
    %203 = arith.mulf %202, %200 : vector<2x32xf32>
    %204 = arith.mulf %195, %169 : vector<2x32xf32>
    %205 = arith.addf %203, %204 : vector<2x32xf32>
    %206 = vector.extract_strided_slice %205 {offsets = [0, 0], sizes = [2, 16], strides = [1, 1]} : vector<2x32xf32> to vector<2x16xf32>
    %207 = vector.extract_strided_slice %205 {offsets = [0, 16], sizes = [2, 16], strides = [1, 1]} : vector<2x32xf32> to vector<2x16xf32>
    %208 = vector.extract_strided_slice %5 {offsets = [10, 0], sizes = [2, 96], strides = [1, 1]} : vector<16x96xf32> to vector<2x96xf32>
    %209 = vector.extract_strided_slice %5 {offsets = [4, 0], sizes = [2, 96], strides = [1, 1]} : vector<16x96xf32> to vector<2x96xf32>
    %210 = vector.shape_cast %26 : vector<1x96xi1> to vector<1x96xi1>
    %211 = vector.broadcast %210 : vector<1x96xi1> to vector<2x96xi1>
    %212 = arith.select %211, %208, %209 : vector<2x96xi1>, vector<2x96xf32>
    %cst_33 = arith.constant dense<0.000000e+00> : vector<2x96xf32>
    %213 = tpu.matmul %205, %6, %cst_33 {dimension_numbers = #tpu.dot_dimension_numbers<[1], [0], [0], [1], [0, 0, 1, 1], [], []>} : vector<2x32xf32>, vector<32x96xf32>, vector<2x96xf32> -> vector<2x96xf32>
    %214 = vector.broadcast %7 : vector<1x96xf32> to vector<2x96xf32>
    %215 = arith.addf %213, %214 : vector<2x96xf32>
    %216 = vector.extract_strided_slice %212 {offsets = [0, 0], sizes = [2, 32], strides = [1, 1]} : vector<2x96xf32> to vector<2x32xf32>
    %217 = vector.extract_strided_slice %215 {offsets = [0, 0], sizes = [2, 32], strides = [1, 1]} : vector<2x96xf32> to vector<2x32xf32>
    %218 = arith.addf %216, %217 : vector<2x32xf32>
    %219 = arith.negf %218 : vector<2x32xf32>
    %220 = math.exp %219 : vector<2x32xf32>
    %cst_34 = arith.constant 1.000000e+00 : f32
    %221 = vector.broadcast %cst_34 : f32 to vector<2x32xf32>
    %222 = arith.addf %221, %220 : vector<2x32xf32>
    %223 = arith.divf %221, %222 : vector<2x32xf32>
    %224 = vector.extract_strided_slice %212 {offsets = [0, 32], sizes = [2, 32], strides = [1, 1]} : vector<2x96xf32> to vector<2x32xf32>
    %225 = vector.extract_strided_slice %215 {offsets = [0, 32], sizes = [2, 32], strides = [1, 1]} : vector<2x96xf32> to vector<2x32xf32>
    %226 = arith.addf %224, %225 : vector<2x32xf32>
    %227 = arith.negf %226 : vector<2x32xf32>
    %228 = math.exp %227 : vector<2x32xf32>
    %cst_35 = arith.constant 1.000000e+00 : f32
    %229 = vector.broadcast %cst_35 : f32 to vector<2x32xf32>
    %230 = arith.addf %229, %228 : vector<2x32xf32>
    %231 = arith.divf %229, %230 : vector<2x32xf32>
    %232 = vector.extract_strided_slice %212 {offsets = [0, 64], sizes = [2, 32], strides = [1, 1]} : vector<2x96xf32> to vector<2x32xf32>
    %233 = vector.extract_strided_slice %215 {offsets = [0, 64], sizes = [2, 32], strides = [1, 1]} : vector<2x96xf32> to vector<2x32xf32>
    %234 = arith.mulf %223, %233 : vector<2x32xf32>
    %235 = arith.addf %232, %234 : vector<2x32xf32>
    %236 = math.tanh %235 : vector<2x32xf32>
    %cst_36 = arith.constant 1.000000e+00 : f32
    %237 = vector.broadcast %cst_36 : f32 to vector<2x32xf32>
    %238 = arith.subf %237, %231 : vector<2x32xf32>
    %239 = arith.mulf %238, %236 : vector<2x32xf32>
    %240 = arith.mulf %231, %205 : vector<2x32xf32>
    %241 = arith.addf %239, %240 : vector<2x32xf32>
    %242 = vector.extract_strided_slice %241 {offsets = [0, 0], sizes = [2, 16], strides = [1, 1]} : vector<2x32xf32> to vector<2x16xf32>
    %243 = vector.extract_strided_slice %241 {offsets = [0, 16], sizes = [2, 16], strides = [1, 1]} : vector<2x32xf32> to vector<2x16xf32>
    %244 = vector.extract_strided_slice %5 {offsets = [12, 0], sizes = [2, 96], strides = [1, 1]} : vector<16x96xf32> to vector<2x96xf32>
    %245 = vector.extract_strided_slice %5 {offsets = [2, 0], sizes = [2, 96], strides = [1, 1]} : vector<16x96xf32> to vector<2x96xf32>
    %246 = vector.shape_cast %26 : vector<1x96xi1> to vector<1x96xi1>
    %247 = vector.broadcast %246 : vector<1x96xi1> to vector<2x96xi1>
    %248 = arith.select %247, %244, %245 : vector<2x96xi1>, vector<2x96xf32>
    %cst_37 = arith.constant dense<0.000000e+00> : vector<2x96xf32>
    %249 = tpu.matmul %241, %6, %cst_37 {dimension_numbers = #tpu.dot_dimension_numbers<[1], [0], [0], [1], [0, 0, 1, 1], [], []>} : vector<2x32xf32>, vector<32x96xf32>, vector<2x96xf32> -> vector<2x96xf32>
    %250 = vector.broadcast %7 : vector<1x96xf32> to vector<2x96xf32>
    %251 = arith.addf %249, %250 : vector<2x96xf32>
    %252 = vector.extract_strided_slice %248 {offsets = [0, 0], sizes = [2, 32], strides = [1, 1]} : vector<2x96xf32> to vector<2x32xf32>
    %253 = vector.extract_strided_slice %251 {offsets = [0, 0], sizes = [2, 32], strides = [1, 1]} : vector<2x96xf32> to vector<2x32xf32>
    %254 = arith.addf %252, %253 : vector<2x32xf32>
    %255 = arith.negf %254 : vector<2x32xf32>
    %256 = math.exp %255 : vector<2x32xf32>
    %cst_38 = arith.constant 1.000000e+00 : f32
    %257 = vector.broadcast %cst_38 : f32 to vector<2x32xf32>
    %258 = arith.addf %257, %256 : vector<2x32xf32>
    %259 = arith.divf %257, %258 : vector<2x32xf32>
    %260 = vector.extract_strided_slice %248 {offsets = [0, 32], sizes = [2, 32], strides = [1, 1]} : vector<2x96xf32> to vector<2x32xf32>
    %261 = vector.extract_strided_slice %251 {offsets = [0, 32], sizes = [2, 32], strides = [1, 1]} : vector<2x96xf32> to vector<2x32xf32>
    %262 = arith.addf %260, %261 : vector<2x32xf32>
    %263 = arith.negf %262 : vector<2x32xf32>
    %264 = math.exp %263 : vector<2x32xf32>
    %cst_39 = arith.constant 1.000000e+00 : f32
    %265 = vector.broadcast %cst_39 : f32 to vector<2x32xf32>
    %266 = arith.addf %265, %264 : vector<2x32xf32>
    %267 = arith.divf %265, %266 : vector<2x32xf32>
    %268 = vector.extract_strided_slice %248 {offsets = [0, 64], sizes = [2, 32], strides = [1, 1]} : vector<2x96xf32> to vector<2x32xf32>
    %269 = vector.extract_strided_slice %251 {offsets = [0, 64], sizes = [2, 32], strides = [1, 1]} : vector<2x96xf32> to vector<2x32xf32>
    %270 = arith.mulf %259, %269 : vector<2x32xf32>
    %271 = arith.addf %268, %270 : vector<2x32xf32>
    %272 = math.tanh %271 : vector<2x32xf32>
    %cst_40 = arith.constant 1.000000e+00 : f32
    %273 = vector.broadcast %cst_40 : f32 to vector<2x32xf32>
    %274 = arith.subf %273, %267 : vector<2x32xf32>
    %275 = arith.mulf %274, %272 : vector<2x32xf32>
    %276 = arith.mulf %267, %241 : vector<2x32xf32>
    %277 = arith.addf %275, %276 : vector<2x32xf32>
    %278 = vector.extract_strided_slice %277 {offsets = [0, 0], sizes = [2, 16], strides = [1, 1]} : vector<2x32xf32> to vector<2x16xf32>
    %279 = vector.extract_strided_slice %277 {offsets = [0, 16], sizes = [2, 16], strides = [1, 1]} : vector<2x32xf32> to vector<2x16xf32>
    %280 = vector.extract_strided_slice %5 {offsets = [14, 0], sizes = [2, 96], strides = [1, 1]} : vector<16x96xf32> to vector<2x96xf32>
    %281 = vector.extract_strided_slice %5 {offsets = [0, 0], sizes = [2, 96], strides = [1, 1]} : vector<16x96xf32> to vector<2x96xf32>
    %282 = vector.shape_cast %26 : vector<1x96xi1> to vector<1x96xi1>
    %283 = vector.broadcast %282 : vector<1x96xi1> to vector<2x96xi1>
    %284 = arith.select %283, %280, %281 : vector<2x96xi1>, vector<2x96xf32>
    %cst_41 = arith.constant dense<0.000000e+00> : vector<2x96xf32>
    %285 = tpu.matmul %277, %6, %cst_41 {dimension_numbers = #tpu.dot_dimension_numbers<[1], [0], [0], [1], [0, 0, 1, 1], [], []>} : vector<2x32xf32>, vector<32x96xf32>, vector<2x96xf32> -> vector<2x96xf32>
    %286 = vector.broadcast %7 : vector<1x96xf32> to vector<2x96xf32>
    %287 = arith.addf %285, %286 : vector<2x96xf32>
    %288 = vector.extract_strided_slice %284 {offsets = [0, 0], sizes = [2, 32], strides = [1, 1]} : vector<2x96xf32> to vector<2x32xf32>
    %289 = vector.extract_strided_slice %287 {offsets = [0, 0], sizes = [2, 32], strides = [1, 1]} : vector<2x96xf32> to vector<2x32xf32>
    %290 = arith.addf %288, %289 : vector<2x32xf32>
    %291 = arith.negf %290 : vector<2x32xf32>
    %292 = math.exp %291 : vector<2x32xf32>
    %cst_42 = arith.constant 1.000000e+00 : f32
    %293 = vector.broadcast %cst_42 : f32 to vector<2x32xf32>
    %294 = arith.addf %293, %292 : vector<2x32xf32>
    %295 = arith.divf %293, %294 : vector<2x32xf32>
    %296 = vector.extract_strided_slice %284 {offsets = [0, 32], sizes = [2, 32], strides = [1, 1]} : vector<2x96xf32> to vector<2x32xf32>
    %297 = vector.extract_strided_slice %287 {offsets = [0, 32], sizes = [2, 32], strides = [1, 1]} : vector<2x96xf32> to vector<2x32xf32>
    %298 = arith.addf %296, %297 : vector<2x32xf32>
    %299 = arith.negf %298 : vector<2x32xf32>
    %300 = math.exp %299 : vector<2x32xf32>
    %cst_43 = arith.constant 1.000000e+00 : f32
    %301 = vector.broadcast %cst_43 : f32 to vector<2x32xf32>
    %302 = arith.addf %301, %300 : vector<2x32xf32>
    %303 = arith.divf %301, %302 : vector<2x32xf32>
    %304 = vector.extract_strided_slice %284 {offsets = [0, 64], sizes = [2, 32], strides = [1, 1]} : vector<2x96xf32> to vector<2x32xf32>
    %305 = vector.extract_strided_slice %287 {offsets = [0, 64], sizes = [2, 32], strides = [1, 1]} : vector<2x96xf32> to vector<2x32xf32>
    %306 = arith.mulf %295, %305 : vector<2x32xf32>
    %307 = arith.addf %304, %306 : vector<2x32xf32>
    %308 = math.tanh %307 : vector<2x32xf32>
    %cst_44 = arith.constant 1.000000e+00 : f32
    %309 = vector.broadcast %cst_44 : f32 to vector<2x32xf32>
    %310 = arith.subf %309, %303 : vector<2x32xf32>
    %311 = arith.mulf %310, %308 : vector<2x32xf32>
    %312 = arith.mulf %303, %277 : vector<2x32xf32>
    %313 = arith.addf %311, %312 : vector<2x32xf32>
    %314 = vector.extract_strided_slice %313 {offsets = [0, 0], sizes = [2, 16], strides = [1, 1]} : vector<2x32xf32> to vector<2x16xf32>
    %315 = vector.extract_strided_slice %313 {offsets = [0, 16], sizes = [2, 16], strides = [1, 1]} : vector<2x32xf32> to vector<2x16xf32>
    %c0_45 = arith.constant 0 : index
    %c0_46 = arith.constant 0 : index
    %316 = vector.load %arg6[%c0_45, %c0_46] : memref<1x32xf32, #tpu.memory_space<vmem>>, vector<1x32xf32>
    %c0_47 = arith.constant 0 : index
    %c0_48 = arith.constant 0 : index
    %317 = vector.load %arg7[%c0_47, %c0_48] : memref<1x32xf32, #tpu.memory_space<vmem>>, vector<1x32xf32>
    %318 = tpu.concatenate %62, %315 in 1 : vector<2x16xf32>, vector<2x16xf32> -> vector<2x32xf32>
    %cst_49 = arith.constant dense<0.000000e+00> : vector<2xf32>
    %319 = vector.multi_reduction <add>, %318, %cst_49 [1] : vector<2x32xf32> to vector<2xf32>
    %320 = vector.shape_cast %319 : vector<2xf32> to vector<2x1xf32>
    %cst_50 = arith.constant 3.200000e+01 : f32
    %321 = vector.broadcast %cst_50 : f32 to vector<2x1xf32>
    %322 = arith.divf %320, %321 : vector<2x1xf32>
    %323 = vector.broadcast %322 : vector<2x1xf32> to vector<2x32xf32>
    %324 = arith.subf %318, %323 : vector<2x32xf32>
    %325 = arith.mulf %324, %324 : vector<2x32xf32>
    %cst_51 = arith.constant dense<0.000000e+00> : vector<2xf32>
    %326 = vector.multi_reduction <add>, %325, %cst_51 [1] : vector<2x32xf32> to vector<2xf32>
    %327 = vector.shape_cast %326 : vector<2xf32> to vector<2x1xf32>
    %cst_52 = arith.constant 3.200000e+01 : f32
    %328 = vector.broadcast %cst_52 : f32 to vector<2x1xf32>
    %329 = arith.divf %327, %328 : vector<2x1xf32>
    %330 = vector.broadcast %322 : vector<2x1xf32> to vector<2x32xf32>
    %331 = arith.subf %318, %330 : vector<2x32xf32>
    %cst_53 = arith.constant 9.99999974E-6 : f32
    %332 = vector.broadcast %cst_53 : f32 to vector<2x1xf32>
    %333 = arith.addf %329, %332 : vector<2x1xf32>
    %334 = math.rsqrt %333 : vector<2x1xf32>
    %335 = vector.broadcast %334 : vector<2x1xf32> to vector<2x32xf32>
    %336 = arith.mulf %331, %335 : vector<2x32xf32>
    %337 = vector.broadcast %316 : vector<1x32xf32> to vector<2x32xf32>
    %338 = arith.mulf %336, %337 : vector<2x32xf32>
    %339 = vector.broadcast %317 : vector<1x32xf32> to vector<2x32xf32>
    %340 = arith.addf %338, %339 : vector<2x32xf32>
    %341 = tpu.concatenate %98, %279 in 1 : vector<2x16xf32>, vector<2x16xf32> -> vector<2x32xf32>
    %cst_54 = arith.constant dense<0.000000e+00> : vector<2xf32>
    %342 = vector.multi_reduction <add>, %341, %cst_54 [1] : vector<2x32xf32> to vector<2xf32>
    %343 = vector.shape_cast %342 : vector<2xf32> to vector<2x1xf32>
    %cst_55 = arith.constant 3.200000e+01 : f32
    %344 = vector.broadcast %cst_55 : f32 to vector<2x1xf32>
    %345 = arith.divf %343, %344 : vector<2x1xf32>
    %346 = vector.broadcast %345 : vector<2x1xf32> to vector<2x32xf32>
    %347 = arith.subf %341, %346 : vector<2x32xf32>
    %348 = arith.mulf %347, %347 : vector<2x32xf32>
    %cst_56 = arith.constant dense<0.000000e+00> : vector<2xf32>
    %349 = vector.multi_reduction <add>, %348, %cst_56 [1] : vector<2x32xf32> to vector<2xf32>
    %350 = vector.shape_cast %349 : vector<2xf32> to vector<2x1xf32>
    %cst_57 = arith.constant 3.200000e+01 : f32
    %351 = vector.broadcast %cst_57 : f32 to vector<2x1xf32>
    %352 = arith.divf %350, %351 : vector<2x1xf32>
    %353 = vector.broadcast %345 : vector<2x1xf32> to vector<2x32xf32>
    %354 = arith.subf %341, %353 : vector<2x32xf32>
    %cst_58 = arith.constant 9.99999974E-6 : f32
    %355 = vector.broadcast %cst_58 : f32 to vector<2x1xf32>
    %356 = arith.addf %352, %355 : vector<2x1xf32>
    %357 = math.rsqrt %356 : vector<2x1xf32>
    %358 = vector.broadcast %357 : vector<2x1xf32> to vector<2x32xf32>
    %359 = arith.mulf %354, %358 : vector<2x32xf32>
    %360 = vector.broadcast %316 : vector<1x32xf32> to vector<2x32xf32>
    %361 = arith.mulf %359, %360 : vector<2x32xf32>
    %362 = vector.broadcast %317 : vector<1x32xf32> to vector<2x32xf32>
    %363 = arith.addf %361, %362 : vector<2x32xf32>
    %364 = tpu.concatenate %134, %243 in 1 : vector<2x16xf32>, vector<2x16xf32> -> vector<2x32xf32>
    %cst_59 = arith.constant dense<0.000000e+00> : vector<2xf32>
    %365 = vector.multi_reduction <add>, %364, %cst_59 [1] : vector<2x32xf32> to vector<2xf32>
    %366 = vector.shape_cast %365 : vector<2xf32> to vector<2x1xf32>
    %cst_60 = arith.constant 3.200000e+01 : f32
    %367 = vector.broadcast %cst_60 : f32 to vector<2x1xf32>
    %368 = arith.divf %366, %367 : vector<2x1xf32>
    %369 = vector.broadcast %368 : vector<2x1xf32> to vector<2x32xf32>
    %370 = arith.subf %364, %369 : vector<2x32xf32>
    %371 = arith.mulf %370, %370 : vector<2x32xf32>
    %cst_61 = arith.constant dense<0.000000e+00> : vector<2xf32>
    %372 = vector.multi_reduction <add>, %371, %cst_61 [1] : vector<2x32xf32> to vector<2xf32>
    %373 = vector.shape_cast %372 : vector<2xf32> to vector<2x1xf32>
    %cst_62 = arith.constant 3.200000e+01 : f32
    %374 = vector.broadcast %cst_62 : f32 to vector<2x1xf32>
    %375 = arith.divf %373, %374 : vector<2x1xf32>
    %376 = vector.broadcast %368 : vector<2x1xf32> to vector<2x32xf32>
    %377 = arith.subf %364, %376 : vector<2x32xf32>
    %cst_63 = arith.constant 9.99999974E-6 : f32
    %378 = vector.broadcast %cst_63 : f32 to vector<2x1xf32>
    %379 = arith.addf %375, %378 : vector<2x1xf32>
    %380 = math.rsqrt %379 : vector<2x1xf32>
    %381 = vector.broadcast %380 : vector<2x1xf32> to vector<2x32xf32>
    %382 = arith.mulf %377, %381 : vector<2x32xf32>
    %383 = vector.broadcast %316 : vector<1x32xf32> to vector<2x32xf32>
    %384 = arith.mulf %382, %383 : vector<2x32xf32>
    %385 = vector.broadcast %317 : vector<1x32xf32> to vector<2x32xf32>
    %386 = arith.addf %384, %385 : vector<2x32xf32>
    %387 = tpu.concatenate %170, %207 in 1 : vector<2x16xf32>, vector<2x16xf32> -> vector<2x32xf32>
    %cst_64 = arith.constant dense<0.000000e+00> : vector<2xf32>
    %388 = vector.multi_reduction <add>, %387, %cst_64 [1] : vector<2x32xf32> to vector<2xf32>
    %389 = vector.shape_cast %388 : vector<2xf32> to vector<2x1xf32>
    %cst_65 = arith.constant 3.200000e+01 : f32
    %390 = vector.broadcast %cst_65 : f32 to vector<2x1xf32>
    %391 = arith.divf %389, %390 : vector<2x1xf32>
    %392 = vector.broadcast %391 : vector<2x1xf32> to vector<2x32xf32>
    %393 = arith.subf %387, %392 : vector<2x32xf32>
    %394 = arith.mulf %393, %393 : vector<2x32xf32>
    %cst_66 = arith.constant dense<0.000000e+00> : vector<2xf32>
    %395 = vector.multi_reduction <add>, %394, %cst_66 [1] : vector<2x32xf32> to vector<2xf32>
    %396 = vector.shape_cast %395 : vector<2xf32> to vector<2x1xf32>
    %cst_67 = arith.constant 3.200000e+01 : f32
    %397 = vector.broadcast %cst_67 : f32 to vector<2x1xf32>
    %398 = arith.divf %396, %397 : vector<2x1xf32>
    %399 = vector.broadcast %391 : vector<2x1xf32> to vector<2x32xf32>
    %400 = arith.subf %387, %399 : vector<2x32xf32>
    %cst_68 = arith.constant 9.99999974E-6 : f32
    %401 = vector.broadcast %cst_68 : f32 to vector<2x1xf32>
    %402 = arith.addf %398, %401 : vector<2x1xf32>
    %403 = math.rsqrt %402 : vector<2x1xf32>
    %404 = vector.broadcast %403 : vector<2x1xf32> to vector<2x32xf32>
    %405 = arith.mulf %400, %404 : vector<2x32xf32>
    %406 = vector.broadcast %316 : vector<1x32xf32> to vector<2x32xf32>
    %407 = arith.mulf %405, %406 : vector<2x32xf32>
    %408 = vector.broadcast %317 : vector<1x32xf32> to vector<2x32xf32>
    %409 = arith.addf %407, %408 : vector<2x32xf32>
    %410 = tpu.concatenate %206, %171 in 1 : vector<2x16xf32>, vector<2x16xf32> -> vector<2x32xf32>
    %cst_69 = arith.constant dense<0.000000e+00> : vector<2xf32>
    %411 = vector.multi_reduction <add>, %410, %cst_69 [1] : vector<2x32xf32> to vector<2xf32>
    %412 = vector.shape_cast %411 : vector<2xf32> to vector<2x1xf32>
    %cst_70 = arith.constant 3.200000e+01 : f32
    %413 = vector.broadcast %cst_70 : f32 to vector<2x1xf32>
    %414 = arith.divf %412, %413 : vector<2x1xf32>
    %415 = vector.broadcast %414 : vector<2x1xf32> to vector<2x32xf32>
    %416 = arith.subf %410, %415 : vector<2x32xf32>
    %417 = arith.mulf %416, %416 : vector<2x32xf32>
    %cst_71 = arith.constant dense<0.000000e+00> : vector<2xf32>
    %418 = vector.multi_reduction <add>, %417, %cst_71 [1] : vector<2x32xf32> to vector<2xf32>
    %419 = vector.shape_cast %418 : vector<2xf32> to vector<2x1xf32>
    %cst_72 = arith.constant 3.200000e+01 : f32
    %420 = vector.broadcast %cst_72 : f32 to vector<2x1xf32>
    %421 = arith.divf %419, %420 : vector<2x1xf32>
    %422 = vector.broadcast %414 : vector<2x1xf32> to vector<2x32xf32>
    %423 = arith.subf %410, %422 : vector<2x32xf32>
    %cst_73 = arith.constant 9.99999974E-6 : f32
    %424 = vector.broadcast %cst_73 : f32 to vector<2x1xf32>
    %425 = arith.addf %421, %424 : vector<2x1xf32>
    %426 = math.rsqrt %425 : vector<2x1xf32>
    %427 = vector.broadcast %426 : vector<2x1xf32> to vector<2x32xf32>
    %428 = arith.mulf %423, %427 : vector<2x32xf32>
    %429 = vector.broadcast %316 : vector<1x32xf32> to vector<2x32xf32>
    %430 = arith.mulf %428, %429 : vector<2x32xf32>
    %431 = vector.broadcast %317 : vector<1x32xf32> to vector<2x32xf32>
    %432 = arith.addf %430, %431 : vector<2x32xf32>
    %433 = tpu.concatenate %242, %135 in 1 : vector<2x16xf32>, vector<2x16xf32> -> vector<2x32xf32>
    %cst_74 = arith.constant dense<0.000000e+00> : vector<2xf32>
    %434 = vector.multi_reduction <add>, %433, %cst_74 [1] : vector<2x32xf32> to vector<2xf32>
    %435 = vector.shape_cast %434 : vector<2xf32> to vector<2x1xf32>
    %cst_75 = arith.constant 3.200000e+01 : f32
    %436 = vector.broadcast %cst_75 : f32 to vector<2x1xf32>
    %437 = arith.divf %435, %436 : vector<2x1xf32>
    %438 = vector.broadcast %437 : vector<2x1xf32> to vector<2x32xf32>
    %439 = arith.subf %433, %438 : vector<2x32xf32>
    %440 = arith.mulf %439, %439 : vector<2x32xf32>
    %cst_76 = arith.constant dense<0.000000e+00> : vector<2xf32>
    %441 = vector.multi_reduction <add>, %440, %cst_76 [1] : vector<2x32xf32> to vector<2xf32>
    %442 = vector.shape_cast %441 : vector<2xf32> to vector<2x1xf32>
    %cst_77 = arith.constant 3.200000e+01 : f32
    %443 = vector.broadcast %cst_77 : f32 to vector<2x1xf32>
    %444 = arith.divf %442, %443 : vector<2x1xf32>
    %445 = vector.broadcast %437 : vector<2x1xf32> to vector<2x32xf32>
    %446 = arith.subf %433, %445 : vector<2x32xf32>
    %cst_78 = arith.constant 9.99999974E-6 : f32
    %447 = vector.broadcast %cst_78 : f32 to vector<2x1xf32>
    %448 = arith.addf %444, %447 : vector<2x1xf32>
    %449 = math.rsqrt %448 : vector<2x1xf32>
    %450 = vector.broadcast %449 : vector<2x1xf32> to vector<2x32xf32>
    %451 = arith.mulf %446, %450 : vector<2x32xf32>
    %452 = vector.broadcast %316 : vector<1x32xf32> to vector<2x32xf32>
    %453 = arith.mulf %451, %452 : vector<2x32xf32>
    %454 = vector.broadcast %317 : vector<1x32xf32> to vector<2x32xf32>
    %455 = arith.addf %453, %454 : vector<2x32xf32>
    %456 = tpu.concatenate %278, %99 in 1 : vector<2x16xf32>, vector<2x16xf32> -> vector<2x32xf32>
    %cst_79 = arith.constant dense<0.000000e+00> : vector<2xf32>
    %457 = vector.multi_reduction <add>, %456, %cst_79 [1] : vector<2x32xf32> to vector<2xf32>
    %458 = vector.shape_cast %457 : vector<2xf32> to vector<2x1xf32>
    %cst_80 = arith.constant 3.200000e+01 : f32
    %459 = vector.broadcast %cst_80 : f32 to vector<2x1xf32>
    %460 = arith.divf %458, %459 : vector<2x1xf32>
    %461 = vector.broadcast %460 : vector<2x1xf32> to vector<2x32xf32>
    %462 = arith.subf %456, %461 : vector<2x32xf32>
    %463 = arith.mulf %462, %462 : vector<2x32xf32>
    %cst_81 = arith.constant dense<0.000000e+00> : vector<2xf32>
    %464 = vector.multi_reduction <add>, %463, %cst_81 [1] : vector<2x32xf32> to vector<2xf32>
    %465 = vector.shape_cast %464 : vector<2xf32> to vector<2x1xf32>
    %cst_82 = arith.constant 3.200000e+01 : f32
    %466 = vector.broadcast %cst_82 : f32 to vector<2x1xf32>
    %467 = arith.divf %465, %466 : vector<2x1xf32>
    %468 = vector.broadcast %460 : vector<2x1xf32> to vector<2x32xf32>
    %469 = arith.subf %456, %468 : vector<2x32xf32>
    %cst_83 = arith.constant 9.99999974E-6 : f32
    %470 = vector.broadcast %cst_83 : f32 to vector<2x1xf32>
    %471 = arith.addf %467, %470 : vector<2x1xf32>
    %472 = math.rsqrt %471 : vector<2x1xf32>
    %473 = vector.broadcast %472 : vector<2x1xf32> to vector<2x32xf32>
    %474 = arith.mulf %469, %473 : vector<2x32xf32>
    %475 = vector.broadcast %316 : vector<1x32xf32> to vector<2x32xf32>
    %476 = arith.mulf %474, %475 : vector<2x32xf32>
    %477 = vector.broadcast %317 : vector<1x32xf32> to vector<2x32xf32>
    %478 = arith.addf %476, %477 : vector<2x32xf32>
    %479 = tpu.concatenate %314, %63 in 1 : vector<2x16xf32>, vector<2x16xf32> -> vector<2x32xf32>
    %cst_84 = arith.constant dense<0.000000e+00> : vector<2xf32>
    %480 = vector.multi_reduction <add>, %479, %cst_84 [1] : vector<2x32xf32> to vector<2xf32>
    %481 = vector.shape_cast %480 : vector<2xf32> to vector<2x1xf32>
    %cst_85 = arith.constant 3.200000e+01 : f32
    %482 = vector.broadcast %cst_85 : f32 to vector<2x1xf32>
    %483 = arith.divf %481, %482 : vector<2x1xf32>
    %484 = vector.broadcast %483 : vector<2x1xf32> to vector<2x32xf32>
    %485 = arith.subf %479, %484 : vector<2x32xf32>
    %486 = arith.mulf %485, %485 : vector<2x32xf32>
    %cst_86 = arith.constant dense<0.000000e+00> : vector<2xf32>
    %487 = vector.multi_reduction <add>, %486, %cst_86 [1] : vector<2x32xf32> to vector<2xf32>
    %488 = vector.shape_cast %487 : vector<2xf32> to vector<2x1xf32>
    %cst_87 = arith.constant 3.200000e+01 : f32
    %489 = vector.broadcast %cst_87 : f32 to vector<2x1xf32>
    %490 = arith.divf %488, %489 : vector<2x1xf32>
    %491 = vector.broadcast %483 : vector<2x1xf32> to vector<2x32xf32>
    %492 = arith.subf %479, %491 : vector<2x32xf32>
    %cst_88 = arith.constant 9.99999974E-6 : f32
    %493 = vector.broadcast %cst_88 : f32 to vector<2x1xf32>
    %494 = arith.addf %490, %493 : vector<2x1xf32>
    %495 = math.rsqrt %494 : vector<2x1xf32>
    %496 = vector.broadcast %495 : vector<2x1xf32> to vector<2x32xf32>
    %497 = arith.mulf %492, %496 : vector<2x32xf32>
    %498 = vector.broadcast %316 : vector<1x32xf32> to vector<2x32xf32>
    %499 = arith.mulf %497, %498 : vector<2x32xf32>
    %500 = vector.broadcast %317 : vector<1x32xf32> to vector<2x32xf32>
    %501 = arith.addf %499, %500 : vector<2x32xf32>
    %502 = tpu.concatenate %340, %363, %386, %409, %432, %455, %478, %501 in 1 : vector<2x32xf32>, vector<2x32xf32>, vector<2x32xf32>, vector<2x32xf32>, vector<2x32xf32>, vector<2x32xf32>, vector<2x32xf32>, vector<2x32xf32> -> vector<2x256xf32>
    %c0_89 = arith.constant 0 : index
    %c0_90 = arith.constant 0 : index
    %503 = vector.load %arg8[%c0_89, %c0_90] : memref<2x256xf32, #tpu.memory_space<vmem>>, vector<2x256xf32>
    tpu.vector_store %arg8[%c0_89, %c0_90], %502 {strides = array<i32>} : memref<2x256xf32, #tpu.memory_space<vmem>>, vector<2x256xf32>,
    %c0_91 = arith.constant 0 : index
    %c0_92 = arith.constant 0 : index
    %504 = vector.load %arg9[%c0_91, %c0_92] : memref<2x32xf32, #tpu.memory_space<vmem>>, vector<2x32xf32>
    tpu.vector_store %arg9[%c0_91, %c0_92], %313 {strides = array<i32>} : memref<2x32xf32, #tpu.memory_space<vmem>>, vector<2x32xf32>,
    return
  }
  func.func @transform_0(%arg0: i32) -> (i32, i32) {
    %c0_i32 = arith.constant 0 : i32
    %c0_i32_0 = arith.constant 0 : i32
    %c0_i32_1 = arith.constant 0 : i32
    return %c0_i32, %c0_i32_0 : i32, i32
  }
  func.func @transform_1(%arg0: i32) -> (i32, i32) {
    %c0_i32 = arith.constant 0 : i32
    %c0_i32_0 = arith.constant 0 : i32
    %c0_i32_1 = arith.constant 0 : i32
    return %c0_i32, %c0_i32_0 : i32, i32
  }
  func.func @transform_2(%arg0: i32) -> (i32, i32) {
    %c0_i32 = arith.constant 0 : i32
    %c0_i32_0 = arith.constant 0 : i32
    %c0_i32_1 = arith.constant 0 : i32
    return %c0_i32, %c0_i32_0 : i32, i32
  }
  func.func @transform_3(%arg0: i32) -> (i32, i32) {
    %c0_i32 = arith.constant 0 : i32
    %c0_i32_0 = arith.constant 0 : i32
    %c0_i32_1 = arith.constant 0 : i32
    return %c0_i32, %c0_i32_0 : i32, i32
  }
  func.func @transform_4(%arg0: i32) -> (i32, i32) {
    %c0_i32 = arith.constant 0 : i32
    %c0_i32_0 = arith.constant 0 : i32
    %c0_i32_1 = arith.constant 0 : i32
    return %c0_i32, %c0_i32_0 : i32, i32
  }
  func.func @transform_5(%arg0: i32) -> (i32, i32) {
    %c0_i32 = arith.constant 0 : i32
    %c0_i32_0 = arith.constant 0 : i32
    %c0_i32_1 = arith.constant 0 : i32
    return %c0_i32, %c0_i32_0 : i32, i32
  }
  func.func @transform_6(%arg0: i32) -> (i32, i32) {
    %c0_i32 = arith.constant 0 : i32
    %c0_i32_0 = arith.constant 0 : i32
    %c0_i32_1 = arith.constant 0 : i32
    return %c0_i32, %c0_i32_0 : i32, i32
  }
  func.func @transform_7(%arg0: i32) -> (i32, i32) {
    %c0_i32 = arith.constant 0 : i32
    %c0_i32_0 = arith.constant 0 : i32
    %c0_i32_1 = arith.constant 0 : i32
    return %c0_i32, %c0_i32_0 : i32, i32
  }
  func.func @transform_8(%arg0: i32) -> (i32, i32) {
    %c0_i32 = arith.constant 0 : i32
    %c0_i32_0 = arith.constant 0 : i32
    %c0_i32_1 = arith.constant 0 : i32
    return %c0_i32, %c0_i32_0 : i32, i32
  }
}

</mosaic_0001>

<bundles_post_ra>
// kernel: tpu_custom_call.1
= control target key start
LH: loop header
LB: loop body
LE: loop exit
PB: predicated region body
PF: predicated region fallthrough
CT: control target
= control target key end

     0   :  { %14 = vsyncpa [#allocation3], 0  ;;  %s2131_s0 = inlined_call_operand.hbm [shape: f32[16,16], index: 0, kind: input, shape index: {}]   ;;  %s2132_s1 = inlined_call_operand.hbm [shape: f32[16,96], index: 1, kind: input, shape index: {}]   ;;  %s2133_s2 = inlined_call_operand.hbm [shape: f32[32,96], index: 2, kind: input, shape index: {}]   ;;  %s2134_s3 = inlined_call_operand.vmem [shape: f32[1,96], index: 3, kind: input, shape index: {}]   ;;  %s2135_s4 = inlined_call_operand.vmem [shape: f32[1,96], index: 4, kind: input, shape index: {}]   ;;  %s2136_s5 = inlined_call_operand.vmem [shape: f32[1,32], index: 5, kind: input, shape index: {}]   ;;  %s2137_s6 = inlined_call_operand.vmem [shape: f32[1,32], index: 6, kind: input, shape index: {}]   ;;  %s2138_s7 = inlined_call_operand.hbm [shape: f32[2,256], index: 7, kind: output, shape index: {0}]   ;;  %s2139_s8 = inlined_call_operand.hbm [shape: f32[2,32], index: 8, kind: output, shape index: {1}]  }
   0x1   :  { %15 = vsyncpa [#allocation6], 0 }
   0x2   :  { %16 = vsyncpa [#allocation4], 0 }
   0x3   :  { %17 = vsyncpa [#allocation10], 0  ;;  %s1727_s27 = smov [#allocation5]   ;;  %s1728_s29 = smov [#allocation2]  }
   0x4   :  { %s35_s28 = sshll.u32 %s1727_s27, 4  ;;  %s23_s30 = sshll.u32 %s1728_s29, 4  ;;  %s36_s28 = int_to_ptr.vmem [resolvable:$true] %s35_s28  ;;  %s1785_s30 = int_to_ptr.vmem [resolvable:$true] %s23_s30 }
   0x5   :  { %s1609_s11 = scalar_lea.hbm %s2132_s1, 256 }
   0x6   :  { %p1610_p0 = scmp.ne.s32.totalorder %s2132_s1, %s1609_s11  ;;  %p1613_p1 = scmp.lt.u32.totalorder %s1609_s11, %s2132_s1 }
   0x8   :  { %p1615_p2 = pnand %p1613_p1, %p1610_p0 }
   0xa   :  { %1618 = shalt.err (!%p1615_p2)
}
   0xb   :  { %s1619_s16 = scalar_lea.vmem %s36_s28, 256  ;;  %p1624_p4 = scmp.lt.s32.totalorder %s36_s28, %s36_s28 }
   0xc   :  { %p1620_p3 = scmp.ne.s32.totalorder %s36_s28, %s1619_s16  ;;  %p1625_p5 = scmp.lt.s32.totalorder %s1619_s16, %s1619_s16 }
   0xe   :  { %p1626_p6 = por %p1625_p5, %p1624_p4 }
  0x10   :  { %p1627_p7 = pnand %p1626_p6, %p1620_p3 }
  0x12   :  { %1630 = shalt.err (!%p1627_p7)
}
  0x13   :  { %s1729_s17 = smov 128   ;;  %s1730_s18 = smov 8  }
  0x14   :  { %41 = dma.hbm_to_vmem [thread:$0]  %s2132_s1, 256, %s36_s28, [#allocation6], %s1729_s17, %s1729_s17, %s1730_s18  }
  0x15   :  { %s1631_s23 = scalar_lea.hbm %s2131_s0, 256 }
  0x16   :  { %p1632_p8 = scmp.ne.s32.totalorder %s2131_s0, %s1631_s23  ;;  %p1635_p9 = scmp.lt.u32.totalorder %s1631_s23, %s2131_s0 }
  0x18   :  { %p1637_p10 = pnand %p1635_p9, %p1632_p8 }
  0x1a   :  { %1640 = shalt.err (!%p1637_p10)
}
  0x1b   :  { %s1641_s29 = scalar_lea.vmem %s1785_s30, 256  ;;  %p1646_p12 = scmp.lt.s32.totalorder %s1785_s30, %s1785_s30 }
  0x1c   :  { %p1642_p11 = scmp.ne.s32.totalorder %s1785_s30, %s1641_s29  ;;  %p1647_p13 = scmp.lt.s32.totalorder %s1641_s29, %s1641_s29 }
  0x1e   :  { %p1648_p0 = por %p1647_p13, %p1646_p12 }
  0x20   :  { %p1649_p1 = pnand %p1648_p0, %p1642_p11 }
  0x22   :  { %1652 = shalt.err (!%p1649_p1)
}
  0x23   :  { %29 = dma.hbm_to_vmem [thread:$0]  %s2131_s0, 256, %s1785_s30, [#allocation3], %s1729_s17, %s1729_s17, %s1730_s18  }
  0x24   :  { %s1731_s9 = smov [#allocation7]   ;;  %s1653_s13 = scalar_lea.hbm %s2133_s2, 512 }
  0x25   :  { %s47_s10 = sshll.u32 %s1731_s9, 4  ;;  %p1654_p2 = scmp.ne.s32.totalorder %s2133_s2, %s1653_s13  ;;  %s48_s10 = int_to_ptr.vmem [resolvable:$true] %s47_s10 }
  0x26   :  { %p1657_p3 = scmp.lt.u32.totalorder %s1653_s13, %s2133_s2 }
  0x28   :  { %p1659_p4 = pnand %p1657_p3, %p1654_p2 }
  0x2a   :  { %1662 = shalt.err (!%p1659_p4)
}
  0x2b   :  { %s1663_s20 = scalar_lea.vmem %s48_s10, 512  ;;  %p1668_p6 = scmp.lt.s32.totalorder %s48_s10, %s48_s10 }
  0x2c   :  { %p1664_p5 = scmp.ne.s32.totalorder %s48_s10, %s1663_s20  ;;  %p1669_p7 = scmp.lt.s32.totalorder %s1663_s20, %s1663_s20 }
  0x2e   :  { %p1670_p8 = por %p1669_p7, %p1668_p6 }
  0x30   :  { %p1671_p9 = pnand %p1670_p8, %p1664_p5 }
  0x32   :  { %1674 = shalt.err (!%p1671_p9)
}
  0x33   :  { %53 = dma.hbm_to_vmem [thread:$0]  %s2133_s2, 512, %s48_s10, [#allocation6], %s1729_s17, %s1729_s17, %s1730_s18  }
  0x34   :  { %1719 = dma.done.wait [#allocation3], 256  }
  0x35   :  { %1720 = vsyncadd [#allocation3], 4294967040 }
  0x36   :  { %1721 = dma.done.wait [#allocation6], 768  }
  0x37   :  { %1722 = vsyncadd [#allocation6], 4294966528  ;;  %v1732_v0 = vmov 0.0|0.0   ;;  %vm1733_vm0 = vmmov 0   ;;  %v1734_v1 = vmov 0.0   ;;  %vm82_vm1 = vcmask 130048  }
  0x38   :  { %1484 = vmatprep.subr.bf16.mxu1 %v1732_v0  ;;  %1400 = vmatprep.mubr.msk.f32.mxu1 %vm1733_vm0, %v1734_v1  ;;  %v73_v2 = vld [vmem:[#allocation5] sm:$0xff]  ;;  %v74_v3 = vld [vmem:[#allocation5 + $0x8] sm:$0xff]  ;;  %v164_v4 = vld [vmem:[#allocation7] sm:$0xff]  ;;  %v169_v13 = vlaneseq  ;;  %vm196_vm3 = vcmask 261120   ;;  %vm1089_vm4 = vcmask 257026   ;;  %vm1112_vm5 = vcmask 259076  }
  0x39   :  { %v1480_v5 = vpack.c.bf16 %v74_v3, %v73_v2  ;;  %v165_v6 = vld [vmem:[#allocation7 + $0x8] sm:$0xff]  ;;  %v71_v7 = vld [vmem:[#allocation2] sm:$0xff]  ;;  %v166_v9 = vld [vmem:[#allocation7 + $0x10] sm:$0xff]  ;;  %vm1136_vm6 = vcmask 261126   ;;  %vm1052_vm7 = vcmask 254976   ;;  %s1737_s26 = smov 32  }
  0x3a   :  { %v1840_v8 = vpack.c.bf16 %v165_v6, %v164_v4  ;;  %1389 = vmatprep.mubr.msk.f32.mxu0 %vm82_vm1, %v71_v7  ;;  %v167_v10 = vld [vmem:[#allocation7 + $0x18] sm:$0xff]  ;;  %v72_v11 = vld [vmem:[#allocation2 + $0x8] sm:$0xff]  ;;  %v170_v14 = vand.u32 127, %v169_v13  ;;  %v1319_v15 = vld [vmem:[%s2134_s3] ss:$0 sm:$0xff]  ;;  %s1735_s3 = smov 64  }
  0x3b   :  { %1481 = vmatprep.subr.bf16.mxu0 %v1480_v5  ;;  %v1844_v12 = vpack.c.bf16 %v167_v10, %v166_v9  ;;  %v1870_v21 = vld [vmem:[%s2135_s4] ss:$0 sm:$0xff]  ;;  %s1736_s4 = smov 96  }
  0x3c   :  { %1486 = vmatpush3.bf16.msra.mxu1 %v1840_v8  ;;  %1483 = vmatpush3.bf16.msra.mxu0 %v1480_v5  ;;  %v175_v16 = vand.u32 31, %v170_v14 }
  0x3d   :  { %1487 = vmatprep.subr.bf16.mxu1 %v1732_v0  ;;  %1490 = vmatprep.subr.bf16.mxu0 %v1732_v0 }
  0x3e   :  { %vm183_vm2 = vcmp.lt.s32.totalorder %v175_v16, 16 }
  0x3f   :  { %1390 = vmatmul.mubr.msk.f32.vlgmr.msra.gmra.mrb[0].mxu0 %vm82_vm1, %v72_v11 }
  0x40   :  { %1489 = vmatpush3.bf16.msra.mxu1 %v1844_v12  ;;  %1492 = vmatpush3.bf16.msra.mxu0 %v1840_v8 }
  0x41   :  { %1493 = vmatprep.subr.bf16.mxu0 %v1732_v0  ;;  %1411 = vmatprep.mubr.msk.f32.mxu0 %vm1733_vm0, %v1734_v1 }
  0x42   :  { %1496 = vmatprep.subr.bf16.mxu1 %v1732_v0 }
  0x43   :  { %1401 = vmatmul.mubr.f32.vlgmr.msra.gmra.mrb[0].mxu1 %v1734_v1 }
  0x44   :  { %1495 = vmatpush3.bf16.msra.mxu0 %v1844_v12  ;;  %1498 = vmatpush3.bf16.msra.mxu1 %v1840_v8 }
  0x45   :  { %1499 = vmatprep.subr.bf16.mxu1 %v1732_v0  ;;  %1422 = vmatprep.mubr.msk.f32.mxu1 %vm1733_vm0, %v1734_v1 }
  0x46   :  { %1502 = vmatprep.subr.bf16.mxu0 %v1732_v0 }
  0x48   :  { %1501 = vmatpush3.bf16.msra.mxu1 %v1844_v12 }
  0x49   :  { %1508 = vmatprep.subr.bf16.mxu1 %v1732_v0 }
 0x112   :  { %v1391_v17 = vpop.f32.mrb[0].mxu0 }
 0x113   :  { %v161_v18 = vadd.f32 %v1391_v17, %v1319_v15  ;;  %v155_v19 = vpop.f32.mrb[1].mxu0 }
 0x114   :  { %v156_v20 = vadd.f32 %v1319_v15, %v155_v19 }
 0x115   :  { %v187_v22 = vrot.slane %v161_v18, 6  ;;  %v296_v23 = vrot.slane %v161_v18, 2 }
 0x116   :  { %v617_v24 = vrot.slane %v156_v20, 6  ;;  %v723_v25 = vrot.slane %v156_v20, 2  ;;  %v266_v26 = vpop.f32.mrb[0].mxu1 }
 0x117   :  { %v1872_v27 = vsel %vm183_vm2, %v156_v20, %v187_v22  ;;  %v267_v28 = vadd.f32 %v1870_v21, %v266_v26  ;;  %v1402_v29 = vpop.f32.mrb[1].mxu1  ;;  %v1875_v30 = vsel %vm183_vm2, %v156_v20, %v296_v23 }
 0x118   :  { %v1877_v31 = vsel %vm183_vm2, %v161_v18, %v617_v24  ;;  %v1879_v32 = vsel %vm183_vm2, %v161_v18, %v723_v25 }
 0x119   :  { %278 = vrot.lane.b32.xlu0 %v267_v28, %s1735_s3  ;;  %v270_v33 = vadd.f32 %v267_v28, %v1872_v27 }
 0x11b   :  { %v1323_v34 = vmul.f32 -1.442695, %v270_v33 }
 0x11d   :  { %1545 = vpow2.f32 %v1323_v34 }
 0x127   :  { %v1546_v35 = vpop.eup %1545 }
 0x128   :  { %v274_v36 = vadd.f32 1.0, %v1546_v35 }
 0x12a   :  { %1547 = vrcp.f32 %v274_v36 }
 0x134   :  { %v1548_v37 = vpop.eup %1547 }
 0x135   :  { %v288_v43 = vsub.f32 1.0, %v1548_v37  ;;  %v294_v45 = vmul.f32 0.0, %v1548_v37 }
 0x18b   :  { %v279_v38 = vpop.permute.xlu0 %278 }
 0x18c   :  { %v281_v39 = vmul.f32 %v1548_v37, %v279_v38 }
 0x18e   :  { %283 = vrot.lane.b32.xlu0 %v281_v39, %s1735_s3 }
 0x200   :  { %v284_v40 = vpop.permute.xlu0 %283 }
 0x201   :  { %v286_v41 = vadd.f32 %v284_v40, %v1872_v27 }
 0x203   :  { %1549 = vtanh.f32 %v286_v41 }
 0x20d   :  { %v1550_v42 = vpop.eup %1549 }
 0x20e   :  { %290 = vrot.lane.b32.xlu1 %v1550_v42, %s1736_s4 }
 0x280   :  { %v291_v44 = vpop.permute.xlu1 %290 }
 0x281   :  { %v293_v46 = vmul.f32 %v291_v44, %v288_v43 }
 0x283   :  { %v1886_v47 = vadd.f32 %v294_v45, %v293_v46 }
 0x285   :  { %300 = vrot.lane.b32.xlu1 %v1886_v47, %s1736_s4  ;;  %v400_v2 = vrot.slane %v1886_v47, 6 }
 0x2f7   :  { %v1890_v48 = vpop.permute.xlu1 %300 }
 0x2f8   :  { %1412 = vmatmul.mubr.msk.f32.vlgmr.msra.gmra.mrb[2].mxu0 %vm196_vm3, %v1890_v48 }
 0x2f9   :  { %1504 = vmatpush3.bf16.msra.mxu0 %v1840_v8  ;;  %1433 = vmatprep.mubr.msk.f32.mxu0 %vm1733_vm0, %v1734_v1 }
 0x2fa   :  { %1505 = vmatprep.subr.bf16.mxu0 %v1732_v0 }
 0x2fd   :  { %1507 = vmatpush3.bf16.msra.mxu0 %v1844_v12 }
 0x2fe   :  { %1514 = vmatprep.subr.bf16.mxu0 %v1732_v0 }
 0x3cb   :  { %v370_v49 = vpop.f32.mrb[2].mxu0 }
 0x3cc   :  { %v371_v50 = vadd.f32 %v1870_v21, %v370_v49  ;;  %v1413_v51 = vpop.f32.mrb[3].mxu0 }
 0x3ce   :  { %v375_v52 = vrot.slane %v371_v50, 6 }
 0x3d0   :  { %384 = vrot.lane.b32.xlu0 %v375_v52, %s1735_s3  ;;  %v377_v53 = vadd.f32 %v375_v52, %v1875_v30 }
 0x3d2   :  { %v1325_v54 = vmul.f32 -1.442695, %v377_v53 }
 0x3d4   :  { %1551 = vpow2.f32 %v1325_v54 }
 0x3de   :  { %v1552_v55 = vpop.eup %1551 }
 0x3df   :  { %v381_v56 = vadd.f32 1.0, %v1552_v55 }
 0x3e1   :  { %1553 = vrcp.f32 %v381_v56 }
 0x3eb   :  { %v1554_v57 = vpop.eup %1553 }
 0x3ec   :  { %v394_v63 = vsub.f32 1.0, %v1554_v57  ;;  %v402_v5 = vmul.f32 %v1554_v57, %v400_v2 }
 0x442   :  { %v385_v58 = vpop.permute.xlu0 %384 }
 0x443   :  { %v387_v59 = vmul.f32 %v1554_v57, %v385_v58 }
 0x445   :  { %389 = vrot.lane.b32.xlu1 %v387_v59, %s1735_s3 }
 0x4b7   :  { %v390_v60 = vpop.permute.xlu1 %389 }
 0x4b8   :  { %v392_v61 = vadd.f32 %v390_v60, %v1875_v30 }
 0x4ba   :  { %1555 = vtanh.f32 %v392_v61 }
 0x4c4   :  { %v1556_v62 = vpop.eup %1555 }
 0x4c5   :  { %396 = vrot.lane.b32.xlu0 %v1556_v62, %s1736_s4 }
 0x537   :  { %v397_v3 = vpop.permute.xlu0 %396 }
 0x538   :  { %v399_v4 = vmul.f32 %v397_v3, %v394_v63 }
 0x53a   :  { %v1907_v6 = vadd.f32 %v402_v5, %v399_v4 }
 0x53c   :  { %v405_v7 = vrot.slane %v1907_v6, 2  ;;  %v506_v28 = vrot.slane %v1907_v6, 6 }
 0x53e   :  { %406 = vrot.lane.b32.xlu1 %v405_v7, %s1736_s4 }
 0x5b0   :  { %v407_v9 = vpop.permute.xlu1 %406 }
 0x5b1   :  { %1423 = vmatmul.mubr.msk.f32.vlgmr.msra.gmra.mrb[2].mxu1 %vm196_vm3, %v407_v9 }
 0x5b2   :  { %1510 = vmatpush3.bf16.msra.mxu1 %v1840_v8  ;;  %1444 = vmatprep.mubr.msk.f32.mxu1 %vm1733_vm0, %v1734_v1 }
 0x5b3   :  { %1511 = vmatprep.subr.bf16.mxu1 %v1732_v0 }
 0x5b6   :  { %1513 = vmatpush3.bf16.msra.mxu1 %v1844_v12 }
 0x5b7   :  { %1520 = vmatprep.subr.bf16.mxu1 %v1732_v0 }
 0x684   :  { %v476_v10 = vpop.f32.mrb[2].mxu1 }
 0x685   :  { %v477_v11 = vadd.f32 %v1870_v21, %v476_v10  ;;  %v1424_v13 = vpop.f32.mrb[3].mxu1 }
 0x687   :  { %v481_v14 = vrot.slane %v477_v11, 4 }
 0x689   :  { %490 = vrot.lane.b32.xlu0 %v481_v14, %s1735_s3  ;;  %v483_v15 = vadd.f32 %v481_v14, %v1872_v27 }
 0x68b   :  { %v1327_v16 = vmul.f32 -1.442695, %v483_v15 }
 0x68d   :  { %1557 = vpow2.f32 %v1327_v16 }
 0x697   :  { %v1558_v17 = vpop.eup %1557 }
 0x698   :  { %v487_v18 = vadd.f32 1.0, %v1558_v17 }
 0x69a   :  { %1559 = vrcp.f32 %v487_v18 }
 0x6a4   :  { %v1560_v19 = vpop.eup %1559 }
 0x6a5   :  { %v500_v26 = vsub.f32 1.0, %v1560_v19  ;;  %v508_v33 = vmul.f32 %v1560_v19, %v506_v28 }
 0x6fb   :  { %v491_v20 = vpop.permute.xlu0 %490 }
 0x6fc   :  { %v493_v22 = vmul.f32 %v1560_v19, %v491_v20 }
 0x6fe   :  { %495 = vrot.lane.b32.xlu1 %v493_v22, %s1735_s3 }
 0x770   :  { %v496_v23 = vpop.permute.xlu1 %495 }
 0x771   :  { %v498_v24 = vadd.f32 %v496_v23, %v1872_v27 }
 0x773   :  { %1561 = vtanh.f32 %v498_v24 }
 0x77d   :  { %v1562_v25 = vpop.eup %1561 }
 0x77e   :  { %502 = vrot.lane.b32.xlu0 %v1562_v25, %s1736_s4 }
 0x7f0   :  { %v503_v29 = vpop.permute.xlu0 %502 }
 0x7f1   :  { %v505_v34 = vmul.f32 %v503_v29, %v500_v26 }
 0x7f3   :  { %v1927_v35 = vadd.f32 %v508_v33, %v505_v34 }
 0x7f5   :  { %v511_v36 = vrot.slane %v1927_v35, 4  ;;  %v612_v54 = vrot.slane %v1927_v35, 6 }
 0x7f7   :  { %512 = vrot.lane.b32.xlu1 %v511_v36, %s1736_s4 }
 0x869   :  { %v513_v37 = vpop.permute.xlu1 %512 }
 0x86a   :  { %1434 = vmatmul.mubr.msk.f32.vlgmr.msra.gmra.mrb[4].mxu0 %vm196_vm3, %v513_v37 }
 0x86b   :  { %1516 = vmatpush3.bf16.msra.mxu0 %v1840_v8  ;;  %1455 = vmatprep.mubr.msk.f32.mxu0 %vm1733_vm0, %v1734_v1 }
 0x86c   :  { %1517 = vmatprep.subr.bf16.mxu0 %v1732_v0 }
 0x86f   :  { %1519 = vmatpush3.bf16.msra.mxu0 %v1844_v12 }
 0x870   :  { %1526 = vmatprep.subr.bf16.mxu0 %v1732_v0 }
 0x93d   :  { %v582_v27 = vpop.f32.mrb[4].mxu0 }
 0x93e   :  { %v583_v38 = vadd.f32 %v1870_v21, %v582_v27  ;;  %v1435_v39 = vpop.f32.mrb[5].mxu0 }
 0x940   :  { %v587_v40 = vrot.slane %v583_v38, 2 }
 0x942   :  { %596 = vrot.lane.b32.xlu0 %v587_v40, %s1735_s3  ;;  %v589_v41 = vadd.f32 %v587_v40, %v1875_v30 }
 0x944   :  { %v1329_v42 = vmul.f32 -1.442695, %v589_v41 }
 0x946   :  { %1563 = vpow2.f32 %v1329_v42 }
 0x950   :  { %v1564_v43 = vpop.eup %1563 }
 0x951   :  { %v593_v44 = vadd.f32 1.0, %v1564_v43 }
 0x953   :  { %1565 = vrcp.f32 %v593_v44 }
 0x95d   :  { %v1566_v45 = vpop.eup %1565 }
 0x95e   :  { %v606_v53 = vsub.f32 1.0, %v1566_v45  ;;  %v614_v56 = vmul.f32 %v1566_v45, %v612_v54 }
 0x9b4   :  { %v597_v46 = vpop.permute.xlu0 %596 }
 0x9b5   :  { %v599_v49 = vmul.f32 %v1566_v45, %v597_v46 }
 0x9b7   :  { %601 = vrot.lane.b32.xlu1 %v599_v49, %s1735_s3 }
 0xa29   :  { %v602_v50 = vpop.permute.xlu1 %601 }
 0xa2a   :  { %v604_v51 = vadd.f32 %v602_v50, %v1875_v30 }
 0xa2c   :  { %1567 = vtanh.f32 %v604_v51 }
 0xa36   :  { %v1568_v52 = vpop.eup %1567 }
 0xa37   :  { %608 = vrot.lane.b32.xlu0 %v1568_v52, %s1736_s4 }
 0xaa9   :  { %v609_v55 = vpop.permute.xlu0 %608 }
 0xaaa   :  { %v611_v57 = vmul.f32 %v609_v55, %v606_v53 }
 0xaac   :  { %v1945_v58 = vadd.f32 %v614_v56, %v611_v57 }
 0xaae   :  { %v621_v59 = vrot.slane %v1945_v58, 6 }
 0xab0   :  { %622 = vrot.lane.b32.xlu1 %v621_v59, %s1736_s4 }
 0xb22   :  { %v1949_v60 = vpop.permute.xlu1 %622 }
 0xb23   :  { %1445 = vmatmul.mubr.msk.f32.vlgmr.msra.gmra.mrb[4].mxu1 %vm196_vm3, %v1949_v60 }
 0xb24   :  { %1522 = vmatpush3.bf16.msra.mxu1 %v1840_v8  ;;  %1466 = vmatprep.mubr.msk.f32.mxu1 %vm1733_vm0, %v1734_v1 }
 0xb25   :  { %1523 = vmatprep.subr.bf16.mxu1 %v1732_v0 }
 0xb28   :  { %1525 = vmatpush3.bf16.msra.mxu1 %v1844_v12 }
 0xbf6   :  { %v692_v30 = vpop.f32.mrb[4].mxu1 }
 0xbf7   :  { %v693_v61 = vadd.f32 %v1870_v21, %v692_v30  ;;  %v1446_v62 = vpop.f32.mrb[5].mxu1 }
 0xbf9   :  { %704 = vrot.lane.b32.xlu0 %v693_v61, %s1735_s3  ;;  %v696_v63 = vadd.f32 %v693_v61, %v1877_v31 }
 0xbfb   :  { %v1331_v2 = vmul.f32 -1.442695, %v696_v63 }
 0xbfd   :  { %1569 = vpow2.f32 %v1331_v2 }
 0xc07   :  { %v1570_v3 = vpop.eup %1569 }
 0xc08   :  { %v700_v4 = vadd.f32 1.0, %v1570_v3 }
 0xc0a   :  { %1571 = vrcp.f32 %v700_v4 }
 0xc14   :  { %v1572_v5 = vpop.eup %1571 }
 0xc15   :  { %v714_v14 = vsub.f32 1.0, %v1572_v5  ;;  %v721_v16 = vmul.f32 %v1572_v5, %v621_v59 }
 0xc6b   :  { %v705_v7 = vpop.permute.xlu0 %704 }
 0xc6c   :  { %v707_v9 = vmul.f32 %v1572_v5, %v705_v7 }
 0xc6e   :  { %709 = vrot.lane.b32.xlu1 %v707_v9, %s1735_s3 }
 0xce0   :  { %v710_v10 = vpop.permute.xlu1 %709 }
 0xce1   :  { %v712_v11 = vadd.f32 %v710_v10, %v1877_v31 }
 0xce3   :  { %1573 = vtanh.f32 %v712_v11 }
 0xced   :  { %v1574_v13 = vpop.eup %1573 }
 0xcee   :  { %716 = vrot.lane.b32.xlu0 %v1574_v13, %s1736_s4 }
 0xd60   :  { %v717_v15 = vpop.permute.xlu0 %716 }
 0xd61   :  { %v719_v17 = vmul.f32 %v717_v15, %v714_v14 }
 0xd63   :  { %v1964_v18 = vadd.f32 %v721_v16, %v719_v17 }
 0xd65   :  { %727 = vrot.lane.b32.xlu1 %v1964_v18, %s1736_s4  ;;  %v827_v27 = vrot.slane %v1964_v18, 6 }
 0xdd7   :  { %v1968_v19 = vpop.permute.xlu1 %727 }
 0xdd8   :  { %1456 = vmatmul.mubr.msk.f32.vlgmr.msra.gmra.mrb[6].mxu0 %vm196_vm3, %v1968_v19 }
 0xdd9   :  { %1528 = vmatpush3.bf16.msra.mxu0 %v1840_v8  ;;  %1477 = vmatprep.mubr.msk.f32.mxu0 %vm1733_vm0, %v1734_v1 }
 0xdda   :  { %1529 = vmatprep.subr.bf16.mxu0 %v1732_v0 }
 0xddd   :  { %1531 = vmatpush3.bf16.msra.mxu0 %v1844_v12 }
 0xeab   :  { %v797_v20 = vpop.f32.mrb[6].mxu0 }
 0xeac   :  { %v798_v22 = vadd.f32 %v1870_v21, %v797_v20  ;;  %v1457_v23 = vpop.f32.mrb[7].mxu0 }
 0xeae   :  { %v802_v24 = vrot.slane %v798_v22, 6 }
 0xeb0   :  { %811 = vrot.lane.b32.xlu0 %v802_v24, %s1735_s3  ;;  %v804_v25 = vadd.f32 %v802_v24, %v1879_v32 }
 0xeb2   :  { %v1333_v26 = vmul.f32 -1.442695, %v804_v25 }
 0xeb4   :  { %1575 = vpow2.f32 %v1333_v26  ;;  %v1173_v26 = vrot.slane %v1927_v35, 2 }
 0xebe   :  { %v1576_v29 = vpop.eup %1575 }
 0xebf   :  { %v808_v8 = vadd.f32 1.0, %v1576_v29 }
 0xec1   :  { %1577 = vrcp.f32 %v808_v8 }
 0xecb   :  { %v1578_v33 = vpop.eup %1577 }
 0xecc   :  { %v821_v37 = vsub.f32 1.0, %v1578_v33  ;;  %v829_v40 = vmul.f32 %v1578_v33, %v827_v27 }
 0xf22   :  { %v812_v1 = vpop.permute.xlu0 %811 }
 0xf23   :  { %v814_v34 = vmul.f32 %v1578_v33, %v812_v1 }
 0xf25   :  { %816 = vrot.lane.b32.xlu1 %v814_v34, %s1735_s3 }
 0xf97   :  { %v817_v0 = vpop.permute.xlu1 %816 }
 0xf98   :  { %v819_v12 = vadd.f32 %v817_v0, %v1879_v32 }
 0xf9a   :  { %1579 = vtanh.f32 %v819_v12 }
 0xfa4   :  { %v1580_v36 = vpop.eup %1579 }
 0xfa5   :  { %823 = vrot.lane.b32.xlu0 %v1580_v36, %s1736_s4 }
0x1017   :  { %v824_v38 = vpop.permute.xlu0 %823 }
0x1018   :  { %v826_v39 = vmul.f32 %v824_v38, %v821_v37 }
0x101a   :  { %v1984_v41 = vadd.f32 %v829_v40, %v826_v39 }
0x101c   :  { %v832_v42 = vrot.slane %v1984_v41, 2  ;;  %v933_v62 = vrot.slane %v1984_v41, 6 }
0x101e   :  { %833 = vrot.lane.b32.xlu1 %v832_v42, %s1736_s4 }
0x1090   :  { %v834_v43 = vpop.permute.xlu1 %833 }
0x1091   :  { %1467 = vmatmul.mubr.msk.f32.vlgmr.msra.gmra.mrb[6].mxu1 %vm196_vm3, %v834_v43 }
0x1164   :  { %v903_v44 = vpop.f32.mrb[6].mxu1 }
0x1165   :  { %v904_v45 = vadd.f32 %v1870_v21, %v903_v44  ;;  %v1468_v46 = vpop.f32.mrb[7].mxu1 }
0x1167   :  { %v908_v49 = vrot.slane %v904_v45, 4 }
0x1169   :  { %917 = vrot.lane.b32.xlu0 %v908_v49, %s1735_s3  ;;  %v910_v50 = vadd.f32 %v908_v49, %v1877_v31 }
0x116b   :  { %v1335_v51 = vmul.f32 -1.442695, %v910_v50 }
0x116d   :  { %1581 = vpow2.f32 %v1335_v51 }
0x1177   :  { %v1582_v52 = vpop.eup %1581 }
0x1178   :  { %v914_v53 = vadd.f32 1.0, %v1582_v52 }
0x117a   :  { %1583 = vrcp.f32 %v914_v53 }
0x1184   :  { %v1584_v54 = vpop.eup %1583 }
0x1185   :  { %v927_v61 = vsub.f32 1.0, %v1584_v54  ;;  %v935_v2 = vmul.f32 %v1584_v54, %v933_v62 }
0x11db   :  { %v918_v55 = vpop.permute.xlu0 %917 }
0x11dc   :  { %v920_v56 = vmul.f32 %v1584_v54, %v918_v55 }
0x11de   :  { %922 = vrot.lane.b32.xlu1 %v920_v56, %s1735_s3  ;;  %v1154_v56 = vsel %vm82_vm1, %v1968_v19, %v1949_v60 }
0x1250   :  { %v923_v57 = vpop.permute.xlu1 %922 }
0x1251   :  { %v925_v59 = vadd.f32 %v923_v57, %v1877_v31  ;;  %v1155_v57 = vsel %vm1052_vm7, %v1154_v56, 0.0 }
0x1253   :  { %1585 = vtanh.f32 %v925_v59 }
0x125d   :  { %v1586_v30 = vpop.eup %1585 }
0x125e   :  { %929 = vrot.lane.b32.xlu0 %v1586_v30, %s1736_s4 }
0x12d0   :  { %v930_v63 = vpop.permute.xlu0 %929 }
0x12d1   :  { %v932_v3 = vmul.f32 %v930_v63, %v927_v61 }
0x12d3   :  { %v936_v4 = vadd.f32 %v935_v2, %v932_v3 }
0x12d5   :  { %v938_v5 = vrot.slane %v936_v4, 4  ;;  %v1084_v25 = vrot.slane %v936_v4, 2  ;;  %v1039_v33 = vrot.slane %v936_v4, 6 }
0x12d7   :  { %939 = vrot.lane.b32.xlu1 %v938_v5, %s1736_s4 }
0x1349   :  { %v940_v7 = vpop.permute.xlu1 %939 }
0x134a   :  { %1478 = vmatmul.mubr.msk.f32.vlgmr.msra.gmra.mrb[8].mxu0 %vm196_vm3, %v940_v7 }
0x141d   :  { %v1009_v9 = vpop.f32.mrb[8].mxu0 }
0x141e   :  { %v1010_v31 = vadd.f32 %v1870_v21, %v1009_v9  ;;  %v1479_v10 = vpop.f32.mrb[9].mxu0 }
0x1420   :  { %v1014_v11 = vrot.slane %v1010_v31, 2 }
0x1422   :  { %1023 = vrot.lane.b32.xlu0 %v1014_v11, %s1735_s3  ;;  %v1016_v13 = vadd.f32 %v1014_v11, %v1879_v32 }
0x1424   :  { %v1337_v14 = vmul.f32 -1.442695, %v1016_v13 }
0x1426   :  { %1587 = vpow2.f32 %v1337_v14 }
0x1430   :  { %v1588_v15 = vpop.eup %1587 }
0x1431   :  { %v1020_v16 = vadd.f32 1.0, %v1588_v15 }
0x1433   :  { %1589 = vrcp.f32 %v1020_v16 }
0x143d   :  { %v1590_v17 = vpop.eup %1589 }
0x143e   :  { %v1033_v8 = vsub.f32 1.0, %v1590_v17  ;;  %v1041_v1 = vmul.f32 %v1590_v17, %v1039_v33 }
0x1494   :  { %v1024_v20 = vpop.permute.xlu0 %1023 }
0x1495   :  { %v1026_v22 = vmul.f32 %v1590_v17, %v1024_v20 }
0x1497   :  { %1028 = vrot.lane.b32.xlu1 %v1026_v22, %s1735_s3 }
0x149b   :  { %1081 = vrot.lane.b32.xlu1 %v1907_v6, %s1736_s4 }
0x149f   :  { %1170 = vrot.lane.b32.xlu1 %v1984_v41, %s1736_s4 }
0x14a3   :  { %1105 = vrot.lane.b32.xlu1 %v1927_v35, %s1736_s4 }
0x14a7   :  { %1193 = vrot.lane.b32.xlu1 %v936_v4, %s1736_s4 }
0x14ab   :  { %1128 = vrot.lane.b32.xlu1 %v1945_v58, %s1736_s4  ;;  %v1131_v58 = vrot.slane %v1964_v18, 2 }
0x1509   :  { %v1029_v21 = vpop.permute.xlu1 %1028 }
0x150a   :  { %v1031_v23 = vadd.f32 %v1029_v21, %v1879_v32  ;;  %v1218_v32 = vrot.slane %v1886_v47, 2 }
0x150c   :  { %1591 = vtanh.f32 %v1031_v23 }
0x150d   :  { %v1082_v29 = vpop.permute.xlu1 %1081 }
0x1511   :  { %v1171_v12 = vpop.permute.xlu1 %1170 }
0x1515   :  { %v1106_v18 = vpop.permute.xlu1 %1105 }
0x1516   :  { %v1592_v24 = vpop.eup %1591 }
0x1517   :  { %1035 = vrot.lane.b32.xlu0 %v1592_v24, %s1736_s4 }
0x1519   :  { %v1194_v39 = vpop.permute.xlu1 %1193 }
0x151b   :  { %1085 = vrot.lane.b32.xlu0 %v1084_v25, %s1736_s4 }
0x151d   :  { %v1129_v49 = vpop.permute.xlu1 %1128 }
0x151f   :  { %1174 = vrot.lane.b32.xlu0 %v1173_v26, %s1736_s4 }
0x1523   :  { %1108 = vrot.lane.b32.xlu0 %v933_v62, %s1736_s4 }
0x1527   :  { %1196 = vrot.lane.b32.xlu0 %v506_v28, %s1736_s4 }
0x152b   :  { %1132 = vrot.lane.b32.xlu0 %v1131_v58, %s1736_s4 }
0x152f   :  { %1219 = vrot.lane.b32.xlu0 %v1218_v32, %s1736_s4 }
0x1589   :  { %v1036_v35 = vpop.permute.xlu0 %1035 }
0x158a   :  { %v1038_v34 = vmul.f32 %v1036_v35, %v1033_v8 }
0x158c   :  { %v1042_v0 = vadd.f32 %v1041_v1, %v1038_v34 }
0x158d   :  { %v1086_v36 = vpop.permute.xlu0 %1085 }
0x158e   :  { %1215 = vrot.lane.b32.xlu1 %v1042_v0, %s1736_s4  ;;  %v1088_v6 = vsel %vm82_vm1, %v1082_v29, %v1086_v36  ;;  %v1047_v45 = vrot.slane %v1042_v0, 6 }
0x158f   :  { %v1090_v28 = vsel %vm1089_vm4, %v1088_v6, 0.0 }
0x1590   :  { %1091 = vadd.xlane.f32.xlu0 %v1090_v28 }
0x1591   :  { %v1175_v47 = vpop.permute.xlu0 %1174 }
0x1592   :  { %v1177_v43 = vsel %vm82_vm1, %v1171_v12, %v1175_v47  ;;  %v2071_v47 = vld [vmem:[%s2136_s5] ss:$0 sm:$0xff]  ;;  %s1738_s5 = smov [#allocation9]  }
0x1593   :  { %v1178_v44 = vsel %vm1089_vm4, %v1177_v43, 0.0 }
0x1595   :  { %v1109_v37 = vpop.permute.xlu0 %1108 }
0x1596   :  { %v1111_v27 = vsel %vm82_vm1, %v1106_v18, %v1109_v37  ;;  %v2076_v37 = vld [vmem:[%s2137_s6] ss:$0 sm:$0xff]  ;;  %s1305_s6 = sshll.u32 %s1738_s5, 4  ;;  %s1306_s6 = int_to_ptr.vmem [resolvable:$true] %s1305_s6 }
0x1597   :  { %v1113_v38 = vsel %vm1112_vm5, %v1111_v27, 0.0  ;;  %s1675_s27 = scalar_lea.vmem %s1306_s6, 32  ;;  %p1680_p11 = scmp.lt.s32.totalorder %s1306_s6, %s1306_s6 }
0x1598   :  { %1114 = vadd.xlane.f32.xlu0 %v1113_v38  ;;  %p1676_p10 = scmp.ne.s32.totalorder %s1306_s6, %s1675_s27  ;;  %p1681_p12 = scmp.lt.s32.totalorder %s1675_s27, %s1675_s27 }
0x1599   :  { %v1197_v40 = vpop.permute.xlu0 %1196 }
0x159a   :  { %v1199_v41 = vsel %vm82_vm1, %v1194_v39, %v1197_v40  ;;  %p1682_p13 = por %p1681_p12, %p1680_p11 }
0x159b   :  { %v1200_v42 = vsel %vm1112_vm5, %v1199_v41, 0.0 }
0x159c   :  { %1201 = vadd.xlane.f32.xlu0 %v1200_v42  ;;  %p1683_p0 = pnand %p1682_p13, %p1676_p10 }
0x159d   :  { %v1133_v46 = vpop.permute.xlu0 %1132 }
0x159e   :  { %v1135_v50 = vsel %vm82_vm1, %v1129_v49, %v1133_v46 }
0x159f   :  { %v1137_v51 = vsel %vm1136_vm6, %v1135_v50, 0.0 }
0x15a1   :  { %v1220_v52 = vpop.permute.xlu0 %1219 }
0x15b2   :  { %1179 = vadd.xlane.f32.xlu1 %v1178_v44 }
0x15c3   :  { %1048 = vrot.lane.b32.xlu1 %v1047_v45, %s1736_s4 }
0x15e7   :  { %1138 = vadd.xlane.f32.xlu1 %v1137_v51 }
0x1600   :  { %v1216_v53 = vpop.permute.xlu1 %1215 }
0x1601   :  { %1288 = vst.msk [vmem:[#allocation9 - $0x6] sm:$0xc0] %vm1136_vm6, %v1216_v53  ;;  %v1222_v54 = vsel %vm82_vm1, %v1216_v53, %v1220_v52 }
0x1602   :  { %v1223_v55 = vsel %vm1136_vm6, %v1222_v54, 0.0 }
0x1603   :  { %1224 = vadd.xlane.f32.xlu0 %v1223_v55 }
0x1607   :  { %1156 = vadd.xlane.f32.xlu0 %v1155_v57 }
0x161d   :  { %v1092_v59 = vpop.xlane.xlu0 %1091 }
0x161e   :  { %v1093_v30 = vmul.f32 0.03125, %v1092_v59 }
0x1620   :  { %v1094_v61 = vsub.f32 %v1088_v6, %v1093_v30 }
0x1622   :  { %v1095_v62 = vmul.f32 %v1094_v61, %v1094_v61 }
0x1624   :  { %v1096_v63 = vsel %vm1089_vm4, %v1095_v62, 0.0 }
0x1625   :  { %1097 = vadd.xlane.f32.xlu0 %v1096_v63  ;;  %v1115_v2 = vpop.xlane.xlu0 %1114 }
0x1626   :  { %v1116_v3 = vmul.f32 0.03125, %v1115_v2 }
0x1628   :  { %v1117_v5 = vsub.f32 %v1111_v27, %v1116_v3 }
0x1629   :  { %v1202_v22 = vpop.xlane.xlu0 %1201 }
0x162a   :  { %v1118_v19 = vmul.f32 %v1117_v5, %v1117_v5  ;;  %v1203_v24 = vmul.f32 0.03125, %v1202_v22 }
0x162c   :  { %v1119_v31 = vsel %vm1112_vm5, %v1118_v19, 0.0  ;;  %v1204_v29 = vsub.f32 %v1199_v41, %v1203_v24 }
0x162e   :  { %v1205_v34 = vmul.f32 %v1204_v29, %v1204_v29 }
0x1630   :  { %v1206_v0 = vsel %vm1112_vm5, %v1205_v34, 0.0 }
0x163f   :  { %v1180_v4 = vpop.xlane.xlu1 %1179 }
0x1640   :  { %v1181_v10 = vmul.f32 0.03125, %v1180_v4 }
0x1642   :  { %v2051_v14 = vsub.f32 %v1177_v43, %v1181_v10 }
0x1643   :  { %v1049_v7 = vpop.permute.xlu1 %1048 }
0x1644   :  { %v2046_v9 = vsel %vm82_vm1, %v1890_v48, %v1049_v7  ;;  %v1183_v48 = vmul.f32 %v2051_v14, %v2051_v14 }
0x1645   :  { %v1053_v60 = vsel %vm1052_vm7, %v2046_v9, 0.0 }
0x1646   :  { %1054 = vadd.xlane.f32.xlu1 %v1053_v60  ;;  %v1184_v20 = vsel %vm1089_vm4, %v1183_v48, 0.0 }
0x164a   :  { %1120 = vadd.xlane.f32.xlu1 %v1119_v31 }
0x1674   :  { %v1139_v11 = vpop.xlane.xlu1 %1138 }
0x1675   :  { %v1140_v13 = vmul.f32 0.03125, %v1139_v11 }
0x1677   :  { %v1141_v15 = vsub.f32 %v1135_v50, %v1140_v13 }
0x1679   :  { %v1142_v16 = vmul.f32 %v1141_v15, %v1141_v15 }
0x167b   :  { %v1143_v17 = vsel %vm1136_vm6, %v1142_v16, 0.0 }
0x167c   :  { %1144 = vadd.xlane.f32.xlu0 %v1143_v17 }
0x1680   :  { %1185 = vadd.xlane.f32.xlu0 %v1184_v20 }
0x1690   :  { %v1225_v21 = vpop.xlane.xlu0 %1224 }
0x1691   :  { %v1226_v23 = vmul.f32 0.03125, %v1225_v21 }
0x1693   :  { %v2057_v25 = vsub.f32 %v1222_v54, %v1226_v23 }
0x1694   :  { %v1157_v26 = vpop.xlane.xlu0 %1156 }
0x1695   :  { %v1158_v58 = vmul.f32 0.03125, %v1157_v26  ;;  %v1228_v32 = vmul.f32 %v2057_v25, %v2057_v25 }
0x1697   :  { %v2061_v8 = vsub.f32 %v1154_v56, %v1158_v58  ;;  %v1229_v33 = vsel %vm1136_vm6, %v1228_v32, 0.0 }
0x1698   :  { %1230 = vadd.xlane.f32.xlu0 %v1229_v33 }
0x1699   :  { %v1160_v35 = vmul.f32 %v2061_v8, %v2061_v8 }
0x169b   :  { %v1161_v1 = vsel %vm1052_vm7, %v1160_v35, 0.0 }
0x169c   :  { %1162 = vadd.xlane.f32.xlu1 %v1161_v1 }
0x16a0   :  { %1207 = vadd.xlane.f32.xlu1 %v1206_v0 }
0x16b2   :  { %v1098_v12 = vpop.xlane.xlu0 %1097 }
0x16b3   :  { %v1099_v36 = vmul.f32 0.03125, %v1098_v12 }
0x16b5   :  { %v1100_v6 = vadd.f32 1e-05, %v1099_v36 }
0x16b7   :  { %1593 = vrsqrt.f32 %v1100_v6 }
0x16c1   :  { %v1594_v28 = vpop.eup %1593 }
0x16c2   :  { %v1102_v18 = vmul.f32 %v1594_v28, %v1094_v61 }
0x16c4   :  { %v1103_v27 = vmul.f32 %v2071_v47, %v1102_v18 }
0x16c6   :  { %v1104_v38 = vadd.f32 %v2076_v37, %v1103_v27 }
0x16c8   :  { %v1239_v39 = vrot.slane %v1104_v38, 2 }
0x16ca   :  { %1240 = vrot.lane.b32.xlu1 %v1239_v39, %s1737_s26 }
0x16d3   :  { %v1055_v40 = vpop.xlane.xlu1 %1054 }
0x16d4   :  { %v1057_v60 = vmul.f32 0.03125, %v1055_v40 }
0x16d6   :  { %v1058_v10 = vsub.f32 %v2046_v9, %v1057_v60 }
0x16d7   :  { %v1121_v41 = vpop.xlane.xlu1 %1120 }
0x16d8   :  { %v1122_v42 = vmul.f32 0.03125, %v1121_v41 }
0x16da   :  { %v1123_v43 = vadd.f32 1e-05, %v1122_v42 }
0x16dc   :  { %1595 = vrsqrt.f32 %v1123_v43 }
0x16e6   :  { %v1596_v44 = vpop.eup %1595 }
0x16e7   :  { %v1125_v45 = vmul.f32 %v1596_v44, %v1117_v5 }
0x16e9   :  { %v1126_v46 = vmul.f32 %v2071_v47, %v1125_v45 }
0x16eb   :  { %v1127_v49 = vadd.f32 %v2076_v37, %v1126_v46 }
0x16ed   :  { %v1244_v50 = vrot.slane %v1127_v49, 4 }
0x16ef   :  { %1245 = vrot.lane.b32.xlu0 %v1244_v50, %s1735_s3 }
0x1709   :  { %v1145_v51 = vpop.xlane.xlu0 %1144 }
0x170a   :  { %v1146_v52 = vmul.f32 0.03125, %v1145_v51 }
0x170c   :  { %v1147_v53 = vadd.f32 1e-05, %v1146_v52 }
0x170d   :  { %v1186_v63 = vpop.xlane.xlu0 %1185 }
0x170e   :  { %1597 = vrsqrt.f32 %v1147_v53  ;;  %v1187_v3 = vmul.f32 0.03125, %v1186_v63 }
0x1710   :  { %v1188_v5 = vadd.f32 1e-05, %v1187_v3 }
0x1718   :  { %v1598_v54 = vpop.eup %1597 }
0x1719   :  { %v1149_v55 = vmul.f32 %v1598_v54, %v1141_v15  ;;  %v1059_v15 = vmul.f32 %v1058_v10, %v1058_v10 }
0x171b   :  { %v1150_v56 = vmul.f32 %v2071_v47, %v1149_v55  ;;  %v1060_v48 = vsel %vm1052_vm7, %v1059_v15, 0.0 }
0x171d   :  { %v1151_v57 = vadd.f32 %v2076_v37, %v1150_v56 }
0x171f   :  { %v1249_v59 = vrot.slane %v1151_v57, 6 }
0x1721   :  { %1250 = vrot.lane.b32.xlu1 %v1249_v59, %s1736_s4 }
0x1725   :  { %v1231_v4 = vpop.xlane.xlu0 %1230 }
0x1726   :  { %v1232_v7 = vmul.f32 0.03125, %v1231_v4 }
0x1728   :  { %v1233_v19 = vadd.f32 1e-05, %v1232_v7 }
0x1729   :  { %v1163_v30 = vpop.xlane.xlu1 %1162 }
0x172d   :  { %v1208_v61 = vpop.xlane.xlu1 %1207 }
0x172e   :  { %v1209_v62 = vmul.f32 0.03125, %v1208_v61 }
0x1730   :  { %v1210_v2 = vadd.f32 1e-05, %v1209_v62 }
0x1732   :  { %1599 = vrsqrt.f32 %v1210_v2 }
0x1733   :  { %1601 = vrsqrt.f32 %v1188_v5 }
0x1734   :  { %1603 = vrsqrt.f32 %v1233_v19 }
0x173c   :  { %v1600_v31 = vpop.eup %1599 }
0x173d   :  { %v1212_v11 = vmul.f32 %v1600_v31, %v1204_v29  ;;  %v1602_v20 = vpop.eup %1601 }
0x173e   :  { %v1190_v22 = vmul.f32 %v1602_v20, %v2051_v14  ;;  %v1604_v21 = vpop.eup %1603 }
0x173f   :  { %v1213_v13 = vmul.f32 %v2071_v47, %v1212_v11  ;;  %v1235_v9 = vmul.f32 %v1604_v21, %v2057_v25 }
0x1740   :  { %v1191_v23 = vmul.f32 %v2071_v47, %v1190_v22 }
0x1741   :  { %v1214_v16 = vadd.f32 %v2076_v37, %v1213_v13  ;;  %v1236_v26 = vmul.f32 %v2071_v47, %v1235_v9 }
0x1742   :  { %v1192_v24 = vadd.f32 %v2076_v37, %v1191_v23 }
0x1743   :  { %v1259_v17 = vrot.slane %v1214_v16, 4  ;;  %v1237_v32 = vadd.f32 %v2076_v37, %v1236_v26 }
0x1744   :  { %v1254_v58 = vrot.slane %v1192_v24, 2 }
0x1745   :  { %1061 = vadd.xlane.f32.xlu1 %v1060_v48  ;;  %1260 = vrot.lane.b32.xlu0 %v1259_v17, %s1735_s3  ;;  %v1264_v29 = vrot.slane %v1237_v32, 6 }
0x1756   :  { %1255 = vrot.lane.b32.xlu1 %v1254_v58, %s1737_s26 }
0x175a   :  { %1265 = vrot.lane.b32.xlu1 %v1264_v29, %s1736_s4 }
0x175b   :  { %1686 = shalt.err (!%p1683_p0)
}
0x175c   :  { %s1687_s28 = scalar_lea.hbm %s2139_s8, 32 }
0x175d   :  { %p1688_p1 = scmp.ne.s32.totalorder %s2139_s8, %s1687_s28  ;;  %p1691_p2 = scmp.lt.u32.totalorder %s1687_s28, %s2139_s8 }
0x175f   :  { %p1693_p3 = pnand %p1691_p2, %p1688_p1 }
0x1761   :  { %1696 = shalt.err (!%p1693_p3)
}
0x1762   :  { %1308 = dma.vmem_to_hbm [thread:$0]  %s1306_s6, 32, %s2139_s8, [#allocation10]   ;;  %v1164_v14 = vmul.f32 0.03125, %v1163_v30  ;;  %v1241_v25 = vpop.permute.xlu1 %1240  ;;  %v1246_v38 = vpop.permute.xlu0 %1245  ;;  %vm1269_vm8 = vcmask 523264   ;;  %vm1271_vm9 = vcmask 785408  }
0x1763   :  { %s1739_s8 = smov [#allocation8]  }
0x1764   :  { %v1165_v33 = vadd.f32 1e-05, %v1164_v14  ;;  %s1295_s15 = sshll.u32 %s1739_s8, 4  ;;  %s1296_s15 = int_to_ptr.vmem [resolvable:$true] %s1295_s15 }
0x1765   :  { %s1697_s16 = scalar_lea.vmem %s1296_s15, 64  ;;  %p1702_p5 = scmp.lt.s32.totalorder %s1296_s15, %s1296_s15 }
0x1766   :  { %1605 = vrsqrt.f32 %v1165_v33  ;;  %p1698_p4 = scmp.ne.s32.totalorder %s1296_s15, %s1697_s16  ;;  %p1703_p6 = scmp.lt.s32.totalorder %s1697_s16, %s1697_s16 }
0x1768   :  { %p1704_p7 = por %p1703_p6, %p1702_p5 }
0x176a   :  { %p1705_p8 = pnand %p1704_p7, %p1698_p4 }
0x1770   :  { %v1606_v12 = vpop.eup %1605 }
0x1771   :  { %v1167_v36 = vmul.f32 %v1606_v12, %v2061_v8 }
0x1773   :  { %v1168_v6 = vmul.f32 %v2071_v47, %v1167_v36 }
0x1775   :  { %v1169_v40 = vadd.f32 %v2076_v37, %v1168_v6 }
0x1793   :  { %v1251_v35 = vpop.permute.xlu1 %1250 }
0x17b7   :  { %v1261_v44 = vpop.permute.xlu0 %1260 }
0x17d2   :  { %v1062_v1 = vpop.xlane.xlu1 %1061 }
0x17d3   :  { %v1063_v34 = vmul.f32 0.03125, %v1062_v1 }
0x17d5   :  { %v1064_v0 = vadd.f32 1e-05, %v1063_v34 }
0x17d6   :  { %v1256_v18 = vpop.permute.xlu1 %1255 }
0x17d7   :  { %1607 = vrsqrt.f32 %v1064_v0  ;;  %v1273_v41 = vsel %vm196_vm3, %v1169_v40, %v1256_v18 }
0x17d8   :  { %v1274_v46 = vsel %vm1269_vm8, %v1273_v41, %v1261_v44 }
0x17da   :  { %v1266_v43 = vpop.permute.xlu1 %1265 }
0x17db   :  { %v1275_v50 = vsel %vm1271_vm9, %v1274_v46, %v1266_v43 }
0x17e1   :  { %v1608_v28 = vpop.eup %1607 }
0x17e2   :  { %v1066_v27 = vmul.f32 %v1608_v28, %v1058_v10 }
0x17e4   :  { %v1073_v39 = vmul.f32 %v2071_v47, %v1066_v27 }
0x17e6   :  { %v1080_v42 = vadd.f32 %v2076_v37, %v1073_v39 }
0x17e8   :  { %v1268_v8 = vsel %vm196_vm3, %v1080_v42, %v1241_v25 }
0x17e9   :  { %v1270_v45 = vsel %vm1269_vm8, %v1268_v8, %v1246_v38 }
0x17ea   :  { %v1272_v49 = vsel %vm1271_vm9, %v1270_v45, %v1251_v35 }
0x17eb   :  { %v1278_v51 = vcombine.low %v1272_v49, %v1275_v50 }
0x17ed   :  { %1340 = vst.sshfl [vmem:[#allocation8] sm:$0x33 pattern:$0x76325410] %v1278_v51 }
0x17ee   :  { %1708 = shalt.err (!%p1705_p8)
}
0x17ef   :  { %s1709_s0 = scalar_lea.hbm %s2138_s7, 64 }
0x17f0   :  { %p1710_p9 = scmp.ne.s32.totalorder %s2138_s7, %s1709_s0  ;;  %p1713_p10 = scmp.lt.u32.totalorder %s1709_s0, %s2138_s7 }
0x17f2   :  { %p1715_p11 = pnand %p1713_p10, %p1710_p9 }
0x17f4   :  { %1718 = shalt.err (!%p1715_p11)
}
0x17f5   :  { %1298 = dma.vmem_to_hbm [thread:$0]  %s1296_s15, 64, %s2138_s7, [#allocation4]  }
0x17f6   :  { %1723 = dma.done.wait [#allocation4], 64  }
0x17f7   :  { %1724 = vsyncadd [#allocation4], 4294967232 }
0x17f8   :  { %1725 = dma.done.wait [#allocation10], 32  }
0x17f9   :  { %1726 = vsyncadd [#allocation10], 4294967264 }
0x17fa   :  { %1315 = vsyncpa [#allocation3], 1 }
0x17fb   :  { %1316 = vsyncpa [#allocation6], 1 }
0x17fc   :  { %1317 = vsyncpa [#allocation4], 1 }
0x17fd   :  { %1318 = vsyncpa [#allocation10], 1 }

</bundles_post_ra>
